<compile_context>
chip_gen: v7x
topology: tpu7x:2x2x1
jax: 0.10.0
libtpu: 0.0.40
codegen_flags: <defaults>
</compile_context>

<pallas_src>
import jax
import jax.numpy as jnp
from jax.experimental import pallas as pl
from jax.experimental.pallas import tpu as pltpu


def _elu(x):
    return jnp.where(x > 0, x, jnp.exp(jnp.minimum(x, 0.0)) - 1.0)


def _relu(x):
    return jnp.maximum(x, 0.0)


def x_linear_kernel(q_ref, k_ref, v_ref,
                    wq_ref, wk_ref, wv_ref, wm1_ref,
                    wkB_ref, we_ref, c_ref, bias_ref,
                    vmao_ref, km_ref, vm_ref):
    f32 = jnp.float32
    TB, N, D = k_ref.shape           # D == D_k == D_v == D_B (asserted in wrapper)
    D_c = wkB_ref.shape[1]

    # Packed constants (static, 128-aligned slices).
    b_k = bias_ref[0:1, :]
    b_q_k = bias_ref[1:2, :]
    b_v = bias_ref[2:3, :]
    b_v_q = bias_ref[3:4, :]
    b_e = bias_ref[4:5, :]
    b_k_m = bias_ref[5:6, :]
    b_v_m = bias_ref[6:7, :]
    gamma = bias_ref[7:8, :]
    beta = bias_ref[8:9, :]
    b_k_B = c_ref[0:1, :]            # (1, D_c)
    wb_row = c_ref[1:2, :]           # (1, D_c) == W_b^T

    K3 = k_ref[...].astype(f32)      # (TB, N, D) residual / LayerNorm input
    V3 = v_ref[...].astype(f32)
    Kf = k_ref[...].reshape(TB * N, D)
    Vf = v_ref[...].reshape(TB * N, D)
    Q2 = q_ref[...].reshape(TB, q_ref.shape[-1])

    # Q projections: one MXU pass, M = TILE_B, columns = [W_q_k | W_v_q].
    QW = jnp.dot(Q2, wq_ref[...], preferred_element_type=f32)          # (TB, 2D)
    qk = _elu(QW[:, :D] + b_q_k)[:, None, :]                           # (TB, 1, D)
    vq = (QW[:, D:] + b_v_q)[:, None, :]                               # (TB, 1, D)

    # K / V projections: fused [W_k | W_k_m2] and [W_v | W_v_m2], M = TILE_B*N.
    KW = jnp.dot(Kf, wk_ref[...], preferred_element_type=f32)          # (TB*N, 2D)
    VW = jnp.dot(Vf, wv_ref[...], preferred_element_type=f32)          # (TB*N, 2D)

    Bk = _elu(KW[:, :D].reshape(TB, N, D) + b_k) * qk                  # (TB, N, D)
    Bv = (VW[:, :D].reshape(TB, N, D) + b_v) * vq                      # (TB, N, D)

    Bkp = _relu(jnp.dot(Bk.reshape(TB * N, D), wkB_ref[...],
                        preferred_element_type=f32).reshape(TB, N, D_c) + b_k_B)

    # b_s via VPU multiply + lane reduce (no lane-width-1 MXU pass).
    # W_b's scalar bias is omitted: softmax over N is shift-invariant.
    bs = jnp.sum(Bkp * wb_row[None], axis=-1)                          # (TB, N)
    bs = bs - jnp.max(bs, axis=-1, keepdims=True)
    e = jnp.exp(bs)
    beta_s = e / jnp.sum(e, axis=-1, keepdims=True)                    # (TB, N)

    B_gang = jnp.mean(Bkp, axis=1)                                     # (TB, D_c)
    beta_c = jax.nn.sigmoid(
        jnp.dot(B_gang, we_ref[...], preferred_element_type=f32) + b_e)  # (TB, D)

    v_mao = jnp.mean(beta_s[:, :, None] * Bv, axis=1) * beta_c         # (TB, D)
    vmao_ref[...] = v_mao[:, None, :]

    # v_MAO projections: fused [W_k_m1 | W_v_m1], M = TILE_B (broadcast after,
    # instead of matmul on N identical rows).
    MW = jnp.dot(v_mao, wm1_ref[...], preferred_element_type=f32)      # (TB, 2D)
    km1 = MW[:, :D][:, None, :]                                        # (TB, 1, D)
    vm1 = MW[:, D:][:, None, :]

    def layernorm(x):
        mu = jnp.mean(x, axis=-1, keepdims=True)
        var = jnp.mean((x - mu) * (x - mu), axis=-1, keepdims=True)
        return (x - mu) * jax.lax.rsqrt(var + 1e-5) * gamma + beta

    # Single shared LayerNorm (matches the PyTorch module's single self.laynorm).
    km_pre = _relu(km1 + KW[:, D:].reshape(TB, N, D) + b_k_m) + K3
    km_ref[...] = layernorm(km_pre)
    vm_pre = _relu(vm1 + VW[:, D:].reshape(TB, N, D) + b_v_m) + V3
    vm_ref[...] = layernorm(vm_pre)


def x_linear_block(Q, K, V, params, *, tile_b=None, compute_dtype=jnp.bfloat16):
    batch, N, D_k = K.shape
    D_q = Q.shape[-1]
    D_v = V.shape[-1]
    D_B = params["W_k"].shape[1]
    D_c = params["W_k_B"].shape[1]
    # The module's algebra (v_MAO added / concatenated against K- and V-shaped
    # tensors, shared LayerNorm(D_B)) requires these to match.
    assert D_B == D_k == D_v, "X_Linear_block requires D_B == D_k == D_v"

    if tile_b is None:
        # Largest divisor of batch keeping the flattened M (= tile_b*N) ~<= 2048
        # rows; sized against 32 MiB scoped VMEM (safe on v5e/v6e/v7x).
        tile_b = 1
        for cand in range(batch, 0, -1):
            if batch % cand == 0 and cand * N <= 2048:
                tile_b = cand
                break
    assert batch % tile_b == 0
    nb = batch // tile_b

    cd = compute_dtype
    f32 = jnp.float32
    Q3 = Q.reshape(batch, 1, D_q).astype(cd)
    Kc = K.astype(cd)
    Vc = V.astype(cd)

    # MXU-operand slabs (bf16) -- fused along the output (lane) axis.
    wq_slab = jnp.concatenate([params["W_q_k"], params["W_v_q"]], axis=1).astype(cd)
    wk_slab = jnp.concatenate([params["W_k"], params["W_k_m2"]], axis=1).astype(cd)
    wv_slab = jnp.concatenate([params["W_v"], params["W_v_m2"]], axis=1).astype(cd)
    # Weights whose LHS is computed in-kernel in f32 stay f32.
    wm1_slab = jnp.concatenate([params["W_k_m1"], params["W_v_m1"]], axis=1).astype(f32)
    wkB = params["W_k_B"].astype(f32)
    we = params["W_e"].astype(f32)
    c_slab = jnp.concatenate([params["b_k_B"], params["W_b"].T], axis=0).astype(f32)   # (2, D_c)
    bias_slab = jnp.concatenate(
        [params["b_k"], params["b_q_k"], params["b_v"], params["b_v_q"],
         params["b_e"], params["b_k_m"], params["b_v_m"],
         params["ln_gamma"], params["ln_beta"]], axis=0).astype(f32)                   # (9, D_B)

    consts = [wq_slab, wk_slab, wv_slab, wm1_slab, wkB, we, c_slab, bias_slab]

    def batched3(tail):
        return pl.BlockSpec((tile_b,) + tuple(tail), lambda b: (b, 0, 0))

    def const2(arr):
        return pl.BlockSpec(arr.shape, lambda b: (0, 0))

    in_specs = [batched3((1, D_q)), batched3((N, D_k)), batched3((N, D_v))]
    in_specs += [const2(w) for w in consts]

    out_shape = (
        jax.ShapeDtypeStruct((batch, 1, D_B), f32),
        jax.ShapeDtypeStruct((batch, N, D_k), f32),
        jax.ShapeDtypeStruct((batch, N, D_v), f32),
    )
    out_specs = (
        pl.BlockSpec((tile_b, 1, D_B), lambda b: (b, 0, 0)),
        pl.BlockSpec((tile_b, N, D_k), lambda b: (b, 0, 0)),
        pl.BlockSpec((tile_b, N, D_v), lambda b: (b, 0, 0)),
    )

    # Advisory cost estimate for the XLA scheduler.
    flops = (2 * batch * N * (D_k * 2 * D_B + D_v * 2 * D_B + D_B * D_c)
             + 2 * batch * (D_q * 2 * D_B + D_c * D_B + D_B * 2 * D_B))
    transcendentals = batch * N * (D_B + 2) + 3 * batch * D_B
    in_bytes = sum(int(x.size) * x.dtype.itemsize
                   for x in (Q3, Kc, Vc, *consts))
    out_bytes = 4 * (batch * D_B + batch * N * D_k + batch * N * D_v)
    cost = pl.CostEstimate(flops=int(flops),
                           transcendentals=int(transcendentals),
                           bytes_accessed=int(in_bytes + out_bytes))

    v_mao, K_m, V_m = pl.pallas_call(
        x_linear_kernel,
        out_shape=out_shape,
        grid=(nb,),
        in_specs=in_specs,
        out_specs=out_specs,
        compiler_params=pltpu.CompilerParams(dimension_semantics=("parallel",)),
        cost_estimate=cost,
    )(Q3, Kc, Vc, *consts)
    return v_mao.reshape(batch, D_B), K_m, V_m


def init_params(key, D_q, D_k, D_v, D_c, D_B):
    keys = jax.random.split(key, 11)

    def lin(k, din, dout):
        k1, k2 = jax.random.split(k)
        s = 1.0 / jnp.sqrt(din)
        W = jax.random.uniform(k1, (din, dout), jnp.float32, -s, s)
        b = jax.random.uniform(k2, (1, dout), jnp.float32, -s, s)
        return W, b

    p = {}
    p["W_k"], p["b_k"] = lin(keys[0], D_k, D_B)
    p["W_q_k"], p["b_q_k"] = lin(keys[1], D_q, D_B)
    p["W_k_B"], p["b_k_B"] = lin(keys[2], D_B, D_c)
    p["W_b"], p["b_b"] = lin(keys[3], D_c, 1)
    p["W_e"], p["b_e"] = lin(keys[4], D_c, D_B)
    p["W_v"], p["b_v"] = lin(keys[5], D_v, D_B)
    p["W_v_q"], p["b_v_q"] = lin(keys[6], D_q, D_B)
    Wkm, p["b_k_m"] = lin(keys[7], D_v + D_k, D_k)
    p["W_k_m1"], p["W_k_m2"] = Wkm[:D_v], Wkm[D_v:]
    Wvm, p["b_v_m"] = lin(keys[8], D_v + D_v, D_v)
    p["W_v_m1"], p["W_v_m2"] = Wvm[:D_v], Wvm[D_v:]
    p["ln_gamma"] = 1.0 + 0.1 * jax.random.normal(keys[9], (1, D_B), jnp.float32)
    p["ln_beta"] = 0.1 * jax.random.normal(keys[10], (1, D_B), jnp.float32)
    return p


def reference(Q, K, V, p):
    hp = jax.lax.Precision.HIGHEST
    mm = lambda a, b: jnp.matmul(a, b, precision=hp)
    elu = lambda x: jnp.where(x > 0, x, jnp.exp(jnp.minimum(x, 0.0)) - 1.0)
    relu = lambda x: jnp.maximum(x, 0.0)

    Bk = elu(mm(K, p["W_k"]) + p["b_k"]) * elu(mm(Q, p["W_q_k"]) + p["b_q_k"])[:, None, :]
    Bkp = relu(mm(Bk, p["W_k_B"]) + p["b_k_B"])
    bs = (mm(Bkp, p["W_b"]) + p["b_b"])[..., 0]
    beta_s = jax.nn.softmax(bs, axis=1)
    B_gang = jnp.mean(Bkp, axis=1)
    beta_c = jax.nn.sigmoid(mm(B_gang, p["W_e"]) + p["b_e"])
    Bv = (mm(V, p["W_v"]) + p["b_v"]) * (mm(Q, p["W_v_q"]) + p["b_v_q"])[:, None, :]
    v_mao = jnp.mean(beta_s[..., None] * Bv, axis=1) * beta_c
    vm = jnp.broadcast_to(v_mao[:, None, :], K.shape)

    def ln(x):
        mu = jnp.mean(x, -1, keepdims=True)
        var = jnp.mean((x - mu) ** 2, -1, keepdims=True)
        return (x - mu) * jax.lax.rsqrt(var + 1e-5) * p["ln_gamma"] + p["ln_beta"]

    Wkm = jnp.concatenate([p["W_k_m1"], p["W_k_m2"]], 0)
    Wvm = jnp.concatenate([p["W_v_m1"], p["W_v_m2"]], 0)
    K_m = ln(relu(mm(jnp.concatenate([vm, K], -1), Wkm) + p["b_k_m"]) + K)
    V_m = ln(relu(mm(jnp.concatenate([vm, V], -1), Wvm) + p["b_v_m"]) + V)
    return v_mao, K_m, V_m


if __name__ == "__main__":
    batch, N = 8, 8
    D_q = D_k = D_v = D_B = 128   # module requires D_B == D_k == D_v
    D_c = 128

    key = jax.random.PRNGKey(0)
    kq, kk, kv, kp = jax.random.split(key, 4)
    Q = jax.random.normal(kq, (batch, D_q), jnp.float32)
    K = jax.random.normal(kk, (batch, N, D_k), jnp.float32)
    V = jax.random.normal(kv, (batch, N, D_v), jnp.float32)
    params = init_params(kp, D_q, D_k, D_v, D_c, D_B)

    # Pre-round the bf16 MXU operands so the kernel (bf16 operands, f32 accum)
    # and the f32 reference see identical values -> tight tolerance.
    rb = lambda x: x.astype(jnp.bfloat16).astype(jnp.float32)
    Q, K, V = rb(Q), rb(K), rb(V)
    for name in ("W_k", "W_q_k", "W_v", "W_v_q", "W_k_m2", "W_v_m2"):
        params[name] = rb(params[name])

    v_mao, K_m, V_m = jax.block_until_ready(x_linear_block(Q, K, V, params))

    rv, rk, rvm = reference(Q, K, V, params)
    assert jnp.allclose(v_mao, rv, atol=2e-3, rtol=2e-3)
    assert jnp.allclose(K_m, rk, atol=2e-3, rtol=2e-3)
    assert jnp.allclose(V_m, rvm, atol=2e-3, rtol=2e-3)
    print("KERNEL_OK")
</pallas_src>

<mosaic_0001>
module attributes {stable_mosaic.version = 11 : i64} {
  func.func @x_linear_kernel(%arg0: i32, %arg1: memref<8x1x128xbf16, #tpu.memory_space<vmem>>, %arg2: memref<8x8x128xbf16, #tpu.memory_space<vmem>>, %arg3: memref<8x8x128xbf16, #tpu.memory_space<vmem>>, %arg4: memref<128x256xbf16, #tpu.memory_space<vmem>>, %arg5: memref<128x256xbf16, #tpu.memory_space<vmem>>, %arg6: memref<128x256xbf16, #tpu.memory_space<vmem>>, %arg7: memref<128x256xf32, #tpu.memory_space<vmem>>, %arg8: memref<128x128xf32, #tpu.memory_space<vmem>>, %arg9: memref<128x128xf32, #tpu.memory_space<vmem>>, %arg10: memref<2x128xf32, #tpu.memory_space<vmem>>, %arg11: memref<9x128xf32, #tpu.memory_space<vmem>>, %arg12: memref<8x1x128xf32, #tpu.memory_space<vmem>>, %arg13: memref<8x8x128xf32, #tpu.memory_space<vmem>>, %arg14: memref<8x8x128xf32, #tpu.memory_space<vmem>>) attributes {dimension_semantics = [#tpu.dimension_semantics<parallel>], iteration_bounds = array<i64: 1>, scalar_prefetch = 0 : i64, scratch_operands = 0 : i64, tpu.core_type = #tpu.core_type<tc>, window_params = [{transform_indices = @transform_0, window_bounds = array<i64: 8, 1, 128>}, {transform_indices = @transform_1, window_bounds = array<i64: 8, 8, 128>}, {transform_indices = @transform_2, window_bounds = array<i64: 8, 8, 128>}, {pipeline_mode = #tpu.pipeline_mode<synchronous>, transform_indices = @transform_3, window_bounds = array<i64: 128, 256>}, {pipeline_mode = #tpu.pipeline_mode<synchronous>, transform_indices = @transform_4, window_bounds = array<i64: 128, 256>}, {pipeline_mode = #tpu.pipeline_mode<synchronous>, transform_indices = @transform_5, window_bounds = array<i64: 128, 256>}, {pipeline_mode = #tpu.pipeline_mode<synchronous>, transform_indices = @transform_6, window_bounds = array<i64: 128, 256>}, {pipeline_mode = #tpu.pipeline_mode<synchronous>, transform_indices = @transform_7, window_bounds = array<i64: 128, 128>}, {pipeline_mode = #tpu.pipeline_mode<synchronous>, transform_indices = @transform_8, window_bounds = array<i64: 128, 128>}, {pipeline_mode = #tpu.pipeline_mode<synchronous>, transform_indices = @transform_9, window_bounds = array<i64: 2, 128>}, {pipeline_mode = #tpu.pipeline_mode<synchronous>, transform_indices = @transform_10, window_bounds = array<i64: 9, 128>}, {transform_indices = @transform_11, window_bounds = array<i64: 8, 1, 128>}, {transform_indices = @transform_12, window_bounds = array<i64: 8, 8, 128>}, {transform_indices = @transform_13, window_bounds = array<i64: 8, 8, 128>}]} {
    %c0 = arith.constant 0 : index
    %c0_0 = arith.constant 0 : index
    %0 = vector.load %arg11[%c0, %c0_0] : memref<9x128xf32, #tpu.memory_space<vmem>>, vector<1x128xf32>
    %c1 = arith.constant 1 : index
    %c0_1 = arith.constant 0 : index
    %1 = vector.load %arg11[%c1, %c0_1] : memref<9x128xf32, #tpu.memory_space<vmem>>, vector<1x128xf32>
    %c2 = arith.constant 2 : index
    %c0_2 = arith.constant 0 : index
    %2 = vector.load %arg11[%c2, %c0_2] : memref<9x128xf32, #tpu.memory_space<vmem>>, vector<1x128xf32>
    %c3 = arith.constant 3 : index
    %c0_3 = arith.constant 0 : index
    %3 = vector.load %arg11[%c3, %c0_3] : memref<9x128xf32, #tpu.memory_space<vmem>>, vector<1x128xf32>
    %c4 = arith.constant 4 : index
    %c0_4 = arith.constant 0 : index
    %4 = vector.load %arg11[%c4, %c0_4] : memref<9x128xf32, #tpu.memory_space<vmem>>, vector<1x128xf32>
    %c5 = arith.constant 5 : index
    %c0_5 = arith.constant 0 : index
    %5 = vector.load %arg11[%c5, %c0_5] : memref<9x128xf32, #tpu.memory_space<vmem>>, vector<1x128xf32>
    %c6 = arith.constant 6 : index
    %c0_6 = arith.constant 0 : index
    %6 = vector.load %arg11[%c6, %c0_6] : memref<9x128xf32, #tpu.memory_space<vmem>>, vector<1x128xf32>
    %c7 = arith.constant 7 : index
    %c0_7 = arith.constant 0 : index
    %7 = vector.load %arg11[%c7, %c0_7] : memref<9x128xf32, #tpu.memory_space<vmem>>, vector<1x128xf32>
    %c8 = arith.constant 8 : index
    %c0_8 = arith.constant 0 : index
    %8 = vector.load %arg11[%c8, %c0_8] : memref<9x128xf32, #tpu.memory_space<vmem>>, vector<1x128xf32>
    %c0_9 = arith.constant 0 : index
    %c0_10 = arith.constant 0 : index
    %9 = vector.load %arg10[%c0_9, %c0_10] : memref<2x128xf32, #tpu.memory_space<vmem>>, vector<1x128xf32>
    %c1_11 = arith.constant 1 : index
    %c0_12 = arith.constant 0 : index
    %10 = vector.load %arg10[%c1_11, %c0_12] : memref<2x128xf32, #tpu.memory_space<vmem>>, vector<1x128xf32>
    %c0_13 = arith.constant 0 : index
    %c0_14 = arith.constant 0 : index
    %c0_15 = arith.constant 0 : index
    %11 = vector.load %arg2[%c0_13, %c0_14, %c0_15] : memref<8x8x128xbf16, #tpu.memory_space<vmem>>, vector<8x8x128xbf16>
    %12 = arith.extf %11 : vector<8x8x128xbf16> to vector<8x8x128xf32>
    %c0_16 = arith.constant 0 : index
    %c0_17 = arith.constant 0 : index
    %c0_18 = arith.constant 0 : index
    %13 = vector.load %arg3[%c0_16, %c0_17, %c0_18] : memref<8x8x128xbf16, #tpu.memory_space<vmem>>, vector<8x8x128xbf16>
    %14 = arith.extf %13 : vector<8x8x128xbf16> to vector<8x8x128xf32>
    %c0_19 = arith.constant 0 : index
    %c0_20 = arith.constant 0 : index
    %c0_21 = arith.constant 0 : index
    %15 = vector.load %arg2[%c0_19, %c0_20, %c0_21] : memref<8x8x128xbf16, #tpu.memory_space<vmem>>, vector<8x8x128xbf16>
    %16 = vector.shape_cast %15 : vector<8x8x128xbf16> to vector<64x128xbf16>
    %c0_22 = arith.constant 0 : index
    %c0_23 = arith.constant 0 : index
    %c0_24 = arith.constant 0 : index
    %17 = vector.load %arg3[%c0_22, %c0_23, %c0_24] : memref<8x8x128xbf16, #tpu.memory_space<vmem>>, vector<8x8x128xbf16>
    %18 = vector.shape_cast %17 : vector<8x8x128xbf16> to vector<64x128xbf16>
    %c0_25 = arith.constant 0 : index
    %c0_26 = arith.constant 0 : index
    %c0_27 = arith.constant 0 : index
    %19 = vector.load %arg1[%c0_25, %c0_26, %c0_27] : memref<8x1x128xbf16, #tpu.memory_space<vmem>>, vector<8x1x128xbf16>
    %20 = vector.shape_cast %19 : vector<8x1x128xbf16> to vector<8x128xbf16>
    %c0_28 = arith.constant 0 : index
    %c0_29 = arith.constant 0 : index
    %21 = vector.load %arg4[%c0_28, %c0_29] : memref<128x256xbf16, #tpu.memory_space<vmem>>, vector<128x256xbf16>
    %cst = arith.constant dense<0.000000e+00> : vector<8x256xf32>
    %22 = tpu.matmul %20, %21, %cst {dimension_numbers = #tpu.dot_dimension_numbers<[1], [0], [0], [1], [0, 0, 1, 1], [], []>} : vector<8x128xbf16>, vector<128x256xbf16>, vector<8x256xf32> -> vector<8x256xf32>
    %23 = vector.extract_strided_slice %22 {offsets = [0, 0], sizes = [8, 128], strides = [1, 1]} : vector<8x256xf32> to vector<8x128xf32>
    %24 = vector.broadcast %1 : vector<1x128xf32> to vector<8x128xf32>
    %25 = arith.addf %23, %24 : vector<8x128xf32>
    %cst_30 = arith.constant 0.000000e+00 : f32
    %26 = vector.broadcast %cst_30 : f32 to vector<8x128xf32>
    %27 = arith.cmpf ogt, %25, %26 : vector<8x128xf32>
    %cst_31 = arith.constant 0.000000e+00 : f32
    %28 = vector.broadcast %cst_31 : f32 to vector<8x128xf32>
    %29 = arith.minimumf %25, %28 : vector<8x128xf32>
    %30 = math.exp %29 : vector<8x128xf32>
    %cst_32 = arith.constant 1.000000e+00 : f32
    %31 = vector.broadcast %cst_32 : f32 to vector<8x128xf32>
    %32 = arith.subf %30, %31 : vector<8x128xf32>
    %33 = arith.select %27, %25, %32 : vector<8x128xi1>, vector<8x128xf32>
    %34 = vector.shape_cast %33 : vector<8x128xf32> to vector<8x1x128xf32>
    %35 = vector.extract_strided_slice %22 {offsets = [0, 128], sizes = [8, 128], strides = [1, 1]} : vector<8x256xf32> to vector<8x128xf32>
    %36 = vector.broadcast %3 : vector<1x128xf32> to vector<8x128xf32>
    %37 = arith.addf %35, %36 : vector<8x128xf32>
    %38 = vector.shape_cast %37 : vector<8x128xf32> to vector<8x1x128xf32>
    %c0_33 = arith.constant 0 : index
    %c0_34 = arith.constant 0 : index
    %39 = vector.load %arg5[%c0_33, %c0_34] : memref<128x256xbf16, #tpu.memory_space<vmem>>, vector<128x256xbf16>
    %cst_35 = arith.constant dense<0.000000e+00> : vector<64x256xf32>
    %40 = tpu.matmul %16, %39, %cst_35 {dimension_numbers = #tpu.dot_dimension_numbers<[1], [0], [0], [1], [0, 0, 1, 1], [], []>} : vector<64x128xbf16>, vector<128x256xbf16>, vector<64x256xf32> -> vector<64x256xf32>
    %c0_36 = arith.constant 0 : index
    %c0_37 = arith.constant 0 : index
    %41 = vector.load %arg6[%c0_36, %c0_37] : memref<128x256xbf16, #tpu.memory_space<vmem>>, vector<128x256xbf16>
    %cst_38 = arith.constant dense<0.000000e+00> : vector<64x256xf32>
    %42 = tpu.matmul %18, %41, %cst_38 {dimension_numbers = #tpu.dot_dimension_numbers<[1], [0], [0], [1], [0, 0, 1, 1], [], []>} : vector<64x128xbf16>, vector<128x256xbf16>, vector<64x256xf32> -> vector<64x256xf32>
    %43 = vector.extract_strided_slice %40 {offsets = [0, 0], sizes = [64, 128], strides = [1, 1]} : vector<64x256xf32> to vector<64x128xf32>
    %44 = vector.shape_cast %43 : vector<64x128xf32> to vector<8x8x128xf32>
    %45 = vector.shape_cast %0 : vector<1x128xf32> to vector<1x1x128xf32>
    %46 = vector.broadcast %45 : vector<1x1x128xf32> to vector<8x8x128xf32>
    %47 = arith.addf %44, %46 : vector<8x8x128xf32>
    %cst_39 = arith.constant 0.000000e+00 : f32
    %48 = vector.broadcast %cst_39 : f32 to vector<8x8x128xf32>
    %49 = arith.cmpf ogt, %47, %48 : vector<8x8x128xf32>
    %cst_40 = arith.constant 0.000000e+00 : f32
    %50 = vector.broadcast %cst_40 : f32 to vector<8x8x128xf32>
    %51 = arith.minimumf %47, %50 : vector<8x8x128xf32>
    %52 = math.exp %51 : vector<8x8x128xf32>
    %cst_41 = arith.constant 1.000000e+00 : f32
    %53 = vector.broadcast %cst_41 : f32 to vector<8x8x128xf32>
    %54 = arith.subf %52, %53 : vector<8x8x128xf32>
    %55 = arith.select %49, %47, %54 : vector<8x8x128xi1>, vector<8x8x128xf32>
    %56 = vector.broadcast %34 : vector<8x1x128xf32> to vector<8x8x128xf32>
    %57 = arith.mulf %55, %56 : vector<8x8x128xf32>
    %58 = vector.extract_strided_slice %42 {offsets = [0, 0], sizes = [64, 128], strides = [1, 1]} : vector<64x256xf32> to vector<64x128xf32>
    %59 = vector.shape_cast %58 : vector<64x128xf32> to vector<8x8x128xf32>
    %60 = vector.shape_cast %2 : vector<1x128xf32> to vector<1x1x128xf32>
    %61 = vector.broadcast %60 : vector<1x1x128xf32> to vector<8x8x128xf32>
    %62 = arith.addf %59, %61 : vector<8x8x128xf32>
    %63 = vector.broadcast %38 : vector<8x1x128xf32> to vector<8x8x128xf32>
    %64 = arith.mulf %62, %63 : vector<8x8x128xf32>
    %65 = vector.shape_cast %57 : vector<8x8x128xf32> to vector<64x128xf32>
    %c0_42 = arith.constant 0 : index
    %c0_43 = arith.constant 0 : index
    %66 = vector.load %arg8[%c0_42, %c0_43] : memref<128x128xf32, #tpu.memory_space<vmem>>, vector<128x128xf32>
    %cst_44 = arith.constant dense<0.000000e+00> : vector<64x128xf32>
    %67 = tpu.matmul %65, %66, %cst_44 {dimension_numbers = #tpu.dot_dimension_numbers<[1], [0], [0], [1], [0, 0, 1, 1], [], []>} : vector<64x128xf32>, vector<128x128xf32>, vector<64x128xf32> -> vector<64x128xf32>
    %68 = vector.shape_cast %67 : vector<64x128xf32> to vector<8x8x128xf32>
    %69 = vector.shape_cast %9 : vector<1x128xf32> to vector<1x1x128xf32>
    %70 = vector.broadcast %69 : vector<1x1x128xf32> to vector<8x8x128xf32>
    %71 = arith.addf %68, %70 : vector<8x8x128xf32>
    %cst_45 = arith.constant 0.000000e+00 : f32
    %72 = vector.broadcast %cst_45 : f32 to vector<8x8x128xf32>
    %73 = arith.maximumf %71, %72 : vector<8x8x128xf32>
    %74 = vector.shape_cast %10 : vector<1x128xf32> to vector<1x1x128xf32>
    %75 = vector.broadcast %74 : vector<1x1x128xf32> to vector<8x8x128xf32>
    %76 = arith.mulf %73, %75 : vector<8x8x128xf32>
    %cst_46 = arith.constant dense<0.000000e+00> : vector<8x8xf32>
    %77 = vector.multi_reduction <add>, %76, %cst_46 [2] : vector<8x8x128xf32> to vector<8x8xf32>
    %cst_47 = arith.constant dense<0xFF800000> : vector<8xf32>
    %78 = vector.multi_reduction <maximumf>, %77, %cst_47 [1] : vector<8x8xf32> to vector<8xf32>
    %79 = vector.shape_cast %78 : vector<8xf32> to vector<8x1xf32>
    %80 = vector.broadcast %79 : vector<8x1xf32> to vector<8x8xf32>
    %81 = arith.subf %77, %80 : vector<8x8xf32>
    %82 = math.exp %81 : vector<8x8xf32>
    %cst_48 = arith.constant dense<0.000000e+00> : vector<8xf32>
    %83 = vector.multi_reduction <add>, %82, %cst_48 [1] : vector<8x8xf32> to vector<8xf32>
    %84 = vector.shape_cast %83 : vector<8xf32> to vector<8x1xf32>
    %85 = vector.broadcast %84 : vector<8x1xf32> to vector<8x8xf32>
    %86 = arith.divf %82, %85 : vector<8x8xf32>
    %cst_49 = arith.constant dense<0.000000e+00> : vector<8x128xf32>
    %87 = vector.multi_reduction <add>, %73, %cst_49 [1] : vector<8x8x128xf32> to vector<8x128xf32>
    %cst_50 = arith.constant 8.000000e+00 : f32
    %88 = vector.broadcast %cst_50 : f32 to vector<8x128xf32>
    %89 = arith.divf %87, %88 : vector<8x128xf32>
    %c0_51 = arith.constant 0 : index
    %c0_52 = arith.constant 0 : index
    %90 = vector.load %arg9[%c0_51, %c0_52] : memref<128x128xf32, #tpu.memory_space<vmem>>, vector<128x128xf32>
    %cst_53 = arith.constant dense<0.000000e+00> : vector<8x128xf32>
    %91 = tpu.matmul %89, %90, %cst_53 {dimension_numbers = #tpu.dot_dimension_numbers<[1], [0], [0], [1], [0, 0, 1, 1], [], []>} : vector<8x128xf32>, vector<128x128xf32>, vector<8x128xf32> -> vector<8x128xf32>
    %92 = vector.broadcast %4 : vector<1x128xf32> to vector<8x128xf32>
    %93 = arith.addf %91, %92 : vector<8x128xf32>
    %94 = arith.negf %93 : vector<8x128xf32>
    %95 = math.exp %94 : vector<8x128xf32>
    %cst_54 = arith.constant 1.000000e+00 : f32
    %96 = vector.broadcast %cst_54 : f32 to vector<8x128xf32>
    %97 = arith.addf %96, %95 : vector<8x128xf32>
    %98 = arith.divf %96, %97 : vector<8x128xf32>
    %99 = vector.shape_cast %86 : vector<8x8xf32> to vector<8x8x1xf32>
    %100 = vector.broadcast %99 : vector<8x8x1xf32> to vector<8x8x128xf32>
    %101 = arith.mulf %100, %64 : vector<8x8x128xf32>
    %cst_55 = arith.constant dense<0.000000e+00> : vector<8x128xf32>
    %102 = vector.multi_reduction <add>, %101, %cst_55 [1] : vector<8x8x128xf32> to vector<8x128xf32>
    %cst_56 = arith.constant 8.000000e+00 : f32
    %103 = vector.broadcast %cst_56 : f32 to vector<8x128xf32>
    %104 = arith.divf %102, %103 : vector<8x128xf32>
    %105 = arith.mulf %104, %98 : vector<8x128xf32>
    %106 = vector.shape_cast %105 : vector<8x128xf32> to vector<8x1x128xf32>
    %c0_57 = arith.constant 0 : index
    %c0_58 = arith.constant 0 : index
    %c0_59 = arith.constant 0 : index
    %107 = vector.load %arg12[%c0_57, %c0_58, %c0_59] : memref<8x1x128xf32, #tpu.memory_space<vmem>>, vector<8x1x128xf32>
    tpu.vector_store %arg12[%c0_57, %c0_58, %c0_59], %106 {strides = array<i32>} : memref<8x1x128xf32, #tpu.memory_space<vmem>>, vector<8x1x128xf32>,
    %c0_60 = arith.constant 0 : index
    %c0_61 = arith.constant 0 : index
    %108 = vector.load %arg7[%c0_60, %c0_61] : memref<128x256xf32, #tpu.memory_space<vmem>>, vector<128x256xf32>
    %cst_62 = arith.constant dense<0.000000e+00> : vector<8x256xf32>
    %109 = tpu.matmul %105, %108, %cst_62 {dimension_numbers = #tpu.dot_dimension_numbers<[1], [0], [0], [1], [0, 0, 1, 1], [], []>} : vector<8x128xf32>, vector<128x256xf32>, vector<8x256xf32> -> vector<8x256xf32>
    %110 = vector.extract_strided_slice %109 {offsets = [0, 0], sizes = [8, 128], strides = [1, 1]} : vector<8x256xf32> to vector<8x128xf32>
    %111 = vector.shape_cast %110 : vector<8x128xf32> to vector<8x1x128xf32>
    %112 = vector.extract_strided_slice %109 {offsets = [0, 128], sizes = [8, 128], strides = [1, 1]} : vector<8x256xf32> to vector<8x128xf32>
    %113 = vector.shape_cast %112 : vector<8x128xf32> to vector<8x1x128xf32>
    %114 = vector.extract_strided_slice %40 {offsets = [0, 128], sizes = [64, 128], strides = [1, 1]} : vector<64x256xf32> to vector<64x128xf32>
    %115 = vector.shape_cast %114 : vector<64x128xf32> to vector<8x8x128xf32>
    %116 = vector.broadcast %111 : vector<8x1x128xf32> to vector<8x8x128xf32>
    %117 = arith.addf %116, %115 : vector<8x8x128xf32>
    %118 = vector.shape_cast %5 : vector<1x128xf32> to vector<1x1x128xf32>
    %119 = vector.broadcast %118 : vector<1x1x128xf32> to vector<8x8x128xf32>
    %120 = arith.addf %117, %119 : vector<8x8x128xf32>
    %cst_63 = arith.constant 0.000000e+00 : f32
    %121 = vector.broadcast %cst_63 : f32 to vector<8x8x128xf32>
    %122 = arith.maximumf %120, %121 : vector<8x8x128xf32>
    %123 = arith.addf %122, %12 : vector<8x8x128xf32>
    %cst_64 = arith.constant dense<0.000000e+00> : vector<8x8xf32>
    %124 = vector.multi_reduction <add>, %123, %cst_64 [2] : vector<8x8x128xf32> to vector<8x8xf32>
    %125 = vector.shape_cast %124 : vector<8x8xf32> to vector<8x8x1xf32>
    %cst_65 = arith.constant 1.280000e+02 : f32
    %126 = vector.broadcast %cst_65 : f32 to vector<8x8x1xf32>
    %127 = arith.divf %125, %126 : vector<8x8x1xf32>
    %128 = vector.broadcast %127 : vector<8x8x1xf32> to vector<8x8x128xf32>
    %129 = arith.subf %123, %128 : vector<8x8x128xf32>
    %130 = vector.broadcast %127 : vector<8x8x1xf32> to vector<8x8x128xf32>
    %131 = arith.subf %123, %130 : vector<8x8x128xf32>
    %132 = arith.mulf %129, %131 : vector<8x8x128xf32>
    %cst_66 = arith.constant dense<0.000000e+00> : vector<8x8xf32>
    %133 = vector.multi_reduction <add>, %132, %cst_66 [2] : vector<8x8x128xf32> to vector<8x8xf32>
    %134 = vector.shape_cast %133 : vector<8x8xf32> to vector<8x8x1xf32>
    %cst_67 = arith.constant 1.280000e+02 : f32
    %135 = vector.broadcast %cst_67 : f32 to vector<8x8x1xf32>
    %136 = arith.divf %134, %135 : vector<8x8x1xf32>
    %137 = vector.broadcast %127 : vector<8x8x1xf32> to vector<8x8x128xf32>
    %138 = arith.subf %123, %137 : vector<8x8x128xf32>
    %cst_68 = arith.constant 9.99999974E-6 : f32
    %139 = vector.broadcast %cst_68 : f32 to vector<8x8x1xf32>
    %140 = arith.addf %136, %139 : vector<8x8x1xf32>
    %141 = math.rsqrt %140 : vector<8x8x1xf32>
    %142 = vector.broadcast %141 : vector<8x8x1xf32> to vector<8x8x128xf32>
    %143 = arith.mulf %138, %142 : vector<8x8x128xf32>
    %144 = vector.shape_cast %7 : vector<1x128xf32> to vector<1x1x128xf32>
    %145 = vector.broadcast %144 : vector<1x1x128xf32> to vector<8x8x128xf32>
    %146 = arith.mulf %143, %145 : vector<8x8x128xf32>
    %147 = vector.shape_cast %8 : vector<1x128xf32> to vector<1x1x128xf32>
    %148 = vector.broadcast %147 : vector<1x1x128xf32> to vector<8x8x128xf32>
    %149 = arith.addf %146, %148 : vector<8x8x128xf32>
    %c0_69 = arith.constant 0 : index
    %c0_70 = arith.constant 0 : index
    %c0_71 = arith.constant 0 : index
    %150 = vector.load %arg13[%c0_69, %c0_70, %c0_71] : memref<8x8x128xf32, #tpu.memory_space<vmem>>, vector<8x8x128xf32>
    tpu.vector_store %arg13[%c0_69, %c0_70, %c0_71], %149 {strides = array<i32>} : memref<8x8x128xf32, #tpu.memory_space<vmem>>, vector<8x8x128xf32>,
    %151 = vector.extract_strided_slice %42 {offsets = [0, 128], sizes = [64, 128], strides = [1, 1]} : vector<64x256xf32> to vector<64x128xf32>
    %152 = vector.shape_cast %151 : vector<64x128xf32> to vector<8x8x128xf32>
    %153 = vector.broadcast %113 : vector<8x1x128xf32> to vector<8x8x128xf32>
    %154 = arith.addf %153, %152 : vector<8x8x128xf32>
    %155 = vector.shape_cast %6 : vector<1x128xf32> to vector<1x1x128xf32>
    %156 = vector.broadcast %155 : vector<1x1x128xf32> to vector<8x8x128xf32>
    %157 = arith.addf %154, %156 : vector<8x8x128xf32>
    %cst_72 = arith.constant 0.000000e+00 : f32
    %158 = vector.broadcast %cst_72 : f32 to vector<8x8x128xf32>
    %159 = arith.maximumf %157, %158 : vector<8x8x128xf32>
    %160 = arith.addf %159, %14 : vector<8x8x128xf32>
    %cst_73 = arith.constant dense<0.000000e+00> : vector<8x8xf32>
    %161 = vector.multi_reduction <add>, %160, %cst_73 [2] : vector<8x8x128xf32> to vector<8x8xf32>
    %162 = vector.shape_cast %161 : vector<8x8xf32> to vector<8x8x1xf32>
    %cst_74 = arith.constant 1.280000e+02 : f32
    %163 = vector.broadcast %cst_74 : f32 to vector<8x8x1xf32>
    %164 = arith.divf %162, %163 : vector<8x8x1xf32>
    %165 = vector.broadcast %164 : vector<8x8x1xf32> to vector<8x8x128xf32>
    %166 = arith.subf %160, %165 : vector<8x8x128xf32>
    %167 = vector.broadcast %164 : vector<8x8x1xf32> to vector<8x8x128xf32>
    %168 = arith.subf %160, %167 : vector<8x8x128xf32>
    %169 = arith.mulf %166, %168 : vector<8x8x128xf32>
    %cst_75 = arith.constant dense<0.000000e+00> : vector<8x8xf32>
    %170 = vector.multi_reduction <add>, %169, %cst_75 [2] : vector<8x8x128xf32> to vector<8x8xf32>
    %171 = vector.shape_cast %170 : vector<8x8xf32> to vector<8x8x1xf32>
    %cst_76 = arith.constant 1.280000e+02 : f32
    %172 = vector.broadcast %cst_76 : f32 to vector<8x8x1xf32>
    %173 = arith.divf %171, %172 : vector<8x8x1xf32>
    %174 = vector.broadcast %164 : vector<8x8x1xf32> to vector<8x8x128xf32>
    %175 = arith.subf %160, %174 : vector<8x8x128xf32>
    %cst_77 = arith.constant 9.99999974E-6 : f32
    %176 = vector.broadcast %cst_77 : f32 to vector<8x8x1xf32>
    %177 = arith.addf %173, %176 : vector<8x8x1xf32>
    %178 = math.rsqrt %177 : vector<8x8x1xf32>
    %179 = vector.broadcast %178 : vector<8x8x1xf32> to vector<8x8x128xf32>
    %180 = arith.mulf %175, %179 : vector<8x8x128xf32>
    %181 = vector.shape_cast %7 : vector<1x128xf32> to vector<1x1x128xf32>
    %182 = vector.broadcast %181 : vector<1x1x128xf32> to vector<8x8x128xf32>
    %183 = arith.mulf %180, %182 : vector<8x8x128xf32>
    %184 = vector.shape_cast %8 : vector<1x128xf32> to vector<1x1x128xf32>
    %185 = vector.broadcast %184 : vector<1x1x128xf32> to vector<8x8x128xf32>
    %186 = arith.addf %183, %185 : vector<8x8x128xf32>
    %c0_78 = arith.constant 0 : index
    %c0_79 = arith.constant 0 : index
    %c0_80 = arith.constant 0 : index
    %187 = vector.load %arg14[%c0_78, %c0_79, %c0_80] : memref<8x8x128xf32, #tpu.memory_space<vmem>>, vector<8x8x128xf32>
    tpu.vector_store %arg14[%c0_78, %c0_79, %c0_80], %186 {strides = array<i32>} : memref<8x8x128xf32, #tpu.memory_space<vmem>>, vector<8x8x128xf32>,
    return
  }
  func.func @transform_0(%arg0: i32) -> (i32, i32, i32) {
    %c0_i32 = arith.constant 0 : i32
    %c0_i32_0 = arith.constant 0 : i32
    %c0_i32_1 = arith.constant 0 : i32
    return %arg0, %c0_i32, %c0_i32_0 : i32, i32, i32
  }
  func.func @transform_1(%arg0: i32) -> (i32, i32, i32) {
    %c0_i32 = arith.constant 0 : i32
    %c0_i32_0 = arith.constant 0 : i32
    %c0_i32_1 = arith.constant 0 : i32
    return %arg0, %c0_i32, %c0_i32_0 : i32, i32, i32
  }
  func.func @transform_2(%arg0: i32) -> (i32, i32, i32) {
    %c0_i32 = arith.constant 0 : i32
    %c0_i32_0 = arith.constant 0 : i32
    %c0_i32_1 = arith.constant 0 : i32
    return %arg0, %c0_i32, %c0_i32_0 : i32, i32, i32
  }
  func.func @transform_3(%arg0: i32) -> (i32, i32) {
    %c0_i32 = arith.constant 0 : i32
    %c0_i32_0 = arith.constant 0 : i32
    %c0_i32_1 = arith.constant 0 : i32
    return %c0_i32, %c0_i32_0 : i32, i32
  }
  func.func @transform_4(%arg0: i32) -> (i32, i32) {
    %c0_i32 = arith.constant 0 : i32
    %c0_i32_0 = arith.constant 0 : i32
    %c0_i32_1 = arith.constant 0 : i32
    return %c0_i32, %c0_i32_0 : i32, i32
  }
  func.func @transform_5(%arg0: i32) -> (i32, i32) {
    %c0_i32 = arith.constant 0 : i32
    %c0_i32_0 = arith.constant 0 : i32
    %c0_i32_1 = arith.constant 0 : i32
    return %c0_i32, %c0_i32_0 : i32, i32
  }
  func.func @transform_6(%arg0: i32) -> (i32, i32) {
    %c0_i32 = arith.constant 0 : i32
    %c0_i32_0 = arith.constant 0 : i32
    %c0_i32_1 = arith.constant 0 : i32
    return %c0_i32, %c0_i32_0 : i32, i32
  }
  func.func @transform_7(%arg0: i32) -> (i32, i32) {
    %c0_i32 = arith.constant 0 : i32
    %c0_i32_0 = arith.constant 0 : i32
    %c0_i32_1 = arith.constant 0 : i32
    return %c0_i32, %c0_i32_0 : i32, i32
  }
  func.func @transform_8(%arg0: i32) -> (i32, i32) {
    %c0_i32 = arith.constant 0 : i32
    %c0_i32_0 = arith.constant 0 : i32
    %c0_i32_1 = arith.constant 0 : i32
    return %c0_i32, %c0_i32_0 : i32, i32
  }
  func.func @transform_9(%arg0: i32) -> (i32, i32) {
    %c0_i32 = arith.constant 0 : i32
    %c0_i32_0 = arith.constant 0 : i32
    %c0_i32_1 = arith.constant 0 : i32
    return %c0_i32, %c0_i32_0 : i32, i32
  }
  func.func @transform_10(%arg0: i32) -> (i32, i32) {
    %c0_i32 = arith.constant 0 : i32
    %c0_i32_0 = arith.constant 0 : i32
    %c0_i32_1 = arith.constant 0 : i32
    return %c0_i32, %c0_i32_0 : i32, i32
  }
  func.func @transform_11(%arg0: i32) -> (i32, i32, i32) {
    %c0_i32 = arith.constant 0 : i32
    %c0_i32_0 = arith.constant 0 : i32
    %c0_i32_1 = arith.constant 0 : i32
    return %arg0, %c0_i32, %c0_i32_0 : i32, i32, i32
  }
  func.func @transform_12(%arg0: i32) -> (i32, i32, i32) {
    %c0_i32 = arith.constant 0 : i32
    %c0_i32_0 = arith.constant 0 : i32
    %c0_i32_1 = arith.constant 0 : i32
    return %arg0, %c0_i32, %c0_i32_0 : i32, i32, i32
  }
  func.func @transform_13(%arg0: i32) -> (i32, i32, i32) {
    %c0_i32 = arith.constant 0 : i32
    %c0_i32_0 = arith.constant 0 : i32
    %c0_i32_1 = arith.constant 0 : i32
    return %arg0, %c0_i32, %c0_i32_0 : i32, i32, i32
  }
}

</mosaic_0001>

<bundles_post_ra>
// kernel: tpu_custom_call.1
= control target key start
LH: loop header
LB: loop body
LE: loop exit
PB: predicated region body
PF: predicated region fallthrough
CT: control target
= control target key end

     0   :  { %19 = vsyncpa [#allocation3], 0  ;;  %s4226_s0 = inlined_call_operand.vmem [shape: bf16[8,1,128], index: 0, kind: input, shape index: {}]   ;;  %s4227_s1 = inlined_call_operand.hbm [shape: bf16[8,8,128], index: 1, kind: input, shape index: {}]   ;;  %s4228_s2 = inlined_call_operand.hbm [shape: bf16[8,8,128], index: 2, kind: input, shape index: {}]   ;;  %s4229_s3 = inlined_call_operand.hbm [shape: bf16[128,256], index: 3, kind: input, shape index: {}]   ;;  %s4230_s4 = inlined_call_operand.hbm [shape: bf16[128,256], index: 4, kind: input, shape index: {}]   ;;  %s4231_s5 = inlined_call_operand.hbm [shape: bf16[128,256], index: 5, kind: input, shape index: {}]   ;;  %s4232_s6 = inlined_call_operand.hbm [shape: f32[128,256], index: 6, kind: input, shape index: {}]   ;;  %s4233_s7 = inlined_call_operand.hbm [shape: f32[128,128], index: 7, kind: input, shape index: {}]   ;;  %s4234_s8 = inlined_call_operand.hbm [shape: f32[128,128], index: 8, kind: input, shape index: {}]   ;;  %s4235_s9 = inlined_call_operand.vmem [shape: f32[2,128], index: 9, kind: input, shape index: {}]   ;;  %s4236_s10 = inlined_call_operand.vmem [shape: f32[9,128], index: 10, kind: input, shape index: {}]   ;;  %s4237_s11 = inlined_call_operand.hbm [shape: f32[8,1,128], index: 11, kind: output, shape index: {0}]   ;;  %s4238_s12 = inlined_call_operand.hbm [shape: f32[8,8,128], index: 12, kind: output, shape index: {1}]   ;;  %s4239_s13 = inlined_call_operand.hbm [shape: f32[8,8,128], index: 13, kind: output, shape index: {2}]  }
   0x1   :  { %20 = vsyncpa [#allocation6], 0 }
   0x2   :  { %21 = vsyncpa [#allocation9], 0 }
   0x3   :  { %22 = vsyncpa [#allocation12], 0 }
   0x4   :  { %23 = vsyncpa [#allocation15], 0 }
   0x5   :  { %24 = vsyncpa [#allocation4], 0 }
   0x6   :  { %25 = vsyncpa [#allocation18], 0  ;;  %s3306_s25 = smov [#allocation5]   ;;  %s3050_s29 = scalar_lea.hbm %s4228_s2, 512 }
   0x7   :  { %s45_s26 = sshll.u32 %s3306_s25, 4  ;;  %p3051_p0 = scmp.ne.s32.totalorder %s4228_s2, %s3050_s29  ;;  %s46_s26 = int_to_ptr.vmem [resolvable:$true] %s45_s26 }
   0x8   :  { %p3054_p1 = scmp.lt.u32.totalorder %s3050_s29, %s4228_s2 }
   0xa   :  { %p3056_p2 = pnand %p3054_p1, %p3051_p0 }
   0xc   :  { %3059 = shalt.err (!%p3056_p2)
}
   0xd   :  { %s3060_s17 = scalar_lea.vmem %s46_s26, 512  ;;  %p3065_p4 = scmp.lt.s32.totalorder %s46_s26, %s46_s26 }
   0xe   :  { %p3061_p3 = scmp.ne.s32.totalorder %s46_s26, %s3060_s17  ;;  %p3066_p5 = scmp.lt.s32.totalorder %s3060_s17, %s3060_s17 }
  0x10   :  { %p3067_p6 = por %p3066_p5, %p3065_p4 }
  0x12   :  { %p3068_p7 = pnand %p3067_p6, %p3061_p3 }
  0x14   :  { %3071 = shalt.err (!%p3068_p7)
}
  0x15   :  { %s3307_s18 = smov 64   ;;  %s3308_s19 = smov 4  }
  0x16   :  { %51 = dma.hbm_to_vmem [thread:$0]  %s4228_s2, 512, %s46_s26, [#allocation6], %s3307_s18, %s3307_s18, %s3308_s19  }
  0x17   :  { %s3309_s22 = smov [#allocation8]   ;;  %s3310_s24 = smov [#allocation11]  }
  0x18   :  { %s69_s23 = sshll.u32 %s3309_s22, 4  ;;  %s93_s25 = sshll.u32 %s3310_s24, 4  ;;  %s70_s23 = int_to_ptr.vmem [resolvable:$true] %s69_s23  ;;  %s94_s25 = int_to_ptr.vmem [resolvable:$true] %s93_s25 }
  0x19   :  { %s3072_s29 = scalar_lea.hbm %s4230_s4, 2048 }
  0x1a   :  { %p3073_p8 = scmp.ne.s32.totalorder %s4230_s4, %s3072_s29  ;;  %p3076_p9 = scmp.lt.u32.totalorder %s3072_s29, %s4230_s4 }
  0x1c   :  { %p3078_p10 = pnand %p3076_p9, %p3073_p8 }
  0x1e   :  { %3081 = shalt.err (!%p3078_p10)
}
  0x1f   :  { %s3082_s2 = scalar_lea.vmem %s70_s23, 2048  ;;  %p3087_p12 = scmp.lt.s32.totalorder %s70_s23, %s70_s23 }
  0x20   :  { %p3083_p11 = scmp.ne.s32.totalorder %s70_s23, %s3082_s2  ;;  %p3088_p13 = scmp.lt.s32.totalorder %s3082_s2, %s3082_s2 }
  0x22   :  { %p3089_p0 = por %p3088_p13, %p3087_p12 }
  0x24   :  { %p3090_p1 = pnand %p3089_p0, %p3083_p11 }
  0x26   :  { %3093 = shalt.err (!%p3090_p1)
}
  0x27   :  { %s4240_s26 = smov 128   ;;  %s3312_s17 = smov 8  }
  0x28   :  { %75 = dma.hbm_to_vmem [thread:$0]  %s4230_s4, 2048, %s70_s23, [#allocation9], %s4240_s26, %s4240_s26, %s3312_s17  }
  0x29   :  { %s3094_s27 = scalar_lea.hbm %s4232_s6, 4096 }
  0x2a   :  { %p3095_p2 = scmp.ne.s32.totalorder %s4232_s6, %s3094_s27  ;;  %p3098_p3 = scmp.lt.u32.totalorder %s3094_s27, %s4232_s6 }
  0x2c   :  { %p3100_p4 = pnand %p3098_p3, %p3095_p2 }
  0x2e   :  { %3103 = shalt.err (!%p3100_p4)
}
  0x2f   :  { %s3104_s15 = scalar_lea.vmem %s94_s25, 4096  ;;  %p3109_p6 = scmp.lt.s32.totalorder %s94_s25, %s94_s25 }
  0x30   :  { %p3105_p5 = scmp.ne.s32.totalorder %s94_s25, %s3104_s15  ;;  %p3110_p7 = scmp.lt.s32.totalorder %s3104_s15, %s3104_s15 }
  0x32   :  { %p3111_p8 = por %p3110_p7, %p3109_p6 }
  0x34   :  { %p3112_p9 = pnand %p3111_p8, %p3105_p5 }
  0x36   :  { %3115 = shalt.err (!%p3112_p9)
}
  0x37   :  { %s3313_s4 = smov 256   ;;  %s3314_s23 = smov 16  }
  0x38   :  { %99 = dma.hbm_to_vmem [thread:$0]  %s4232_s6, 4096, %s94_s25, [#allocation12], %s3313_s4, %s3313_s4, %s3314_s23  }
  0x39   :  { %s3315_s20 = smov [#allocation2]   ;;  %s3316_s22 = smov [#allocation7]  }
  0x3a   :  { %s33_s21 = sshll.u32 %s3315_s20, 4  ;;  %s57_s24 = sshll.u32 %s3316_s22, 4  ;;  %s34_s21 = int_to_ptr.vmem [resolvable:$true] %s33_s21  ;;  %s58_s24 = int_to_ptr.vmem [resolvable:$true] %s57_s24 }
  0x3b   :  { %s3116_s29 = scalar_lea.hbm %s4227_s1, 512 }
  0x3c   :  { %p3117_p10 = scmp.ne.s32.totalorder %s4227_s1, %s3116_s29  ;;  %p3120_p11 = scmp.lt.u32.totalorder %s3116_s29, %s4227_s1 }
  0x3e   :  { %p3122_p12 = pnand %p3120_p11, %p3117_p10 }
  0x40   :  { %3125 = shalt.err (!%p3122_p12)
}
  0x41   :  { %s3126_s6 = scalar_lea.vmem %s34_s21, 512  ;;  %p3131_p0 = scmp.lt.s32.totalorder %s34_s21, %s34_s21 }
  0x42   :  { %p3127_p13 = scmp.ne.s32.totalorder %s34_s21, %s3126_s6  ;;  %p3132_p1 = scmp.lt.s32.totalorder %s3126_s6, %s3126_s6 }
  0x44   :  { %p3133_p2 = por %p3132_p1, %p3131_p0 }
  0x46   :  { %p3134_p3 = pnand %p3133_p2, %p3127_p13 }
  0x48   :  { %3137 = shalt.err (!%p3134_p3)
}
  0x49   :  { %39 = dma.hbm_to_vmem [thread:$0]  %s4227_s1, 512, %s34_s21, [#allocation3], %s3307_s18, %s3307_s18, %s3308_s19  }
  0x4a   :  { %s3138_s2 = scalar_lea.hbm %s4229_s3, 2048 }
  0x4b   :  { %p3139_p4 = scmp.ne.s32.totalorder %s4229_s3, %s3138_s2  ;;  %p3142_p5 = scmp.lt.u32.totalorder %s3138_s2, %s4229_s3 }
  0x4d   :  { %p3144_p6 = pnand %p3142_p5, %p3139_p4 }
  0x4f   :  { %3147 = shalt.err (!%p3144_p6)
}
  0x50   :  { %s3148_s29 = scalar_lea.vmem %s58_s24, 2048  ;;  %p3153_p8 = scmp.lt.s32.totalorder %s58_s24, %s58_s24 }
  0x51   :  { %p3149_p7 = scmp.ne.s32.totalorder %s58_s24, %s3148_s29  ;;  %p3154_p9 = scmp.lt.s32.totalorder %s3148_s29, %s3148_s29 }
  0x53   :  { %p3155_p10 = por %p3154_p9, %p3153_p8 }
  0x55   :  { %p3156_p11 = pnand %p3155_p10, %p3149_p7 }
  0x57   :  { %3159 = shalt.err (!%p3156_p11)
}
  0x58   :  { %s4242_s1 = smov 128   ;;  %s3317_s21 = smov [#allocation10]  }
  0x59   :  { %63 = dma.hbm_to_vmem [thread:$0]  %s4229_s3, 2048, %s58_s24, [#allocation6], %s4242_s1, %s4242_s1, %s3312_s17  }
  0x5a   :  { %s81_s30 = sshll.u32 %s3317_s21, 4  ;;  %s3318_s14 = smov [#allocation13]   ;;  %s82_s30 = int_to_ptr.vmem [resolvable:$true] %s81_s30 }
  0x5b   :  { %s105_s15 = sshll.u32 %s3318_s14, 4  ;;  %s3160_s4 = scalar_lea.hbm %s4231_s5, 2048  ;;  %s106_s15 = int_to_ptr.vmem [resolvable:$true] %s105_s15 }
  0x5c   :  { %p3161_p12 = scmp.ne.s32.totalorder %s4231_s5, %s3160_s4  ;;  %p3164_p13 = scmp.lt.u32.totalorder %s3160_s4, %s4231_s5 }
  0x5e   :  { %p3166_p0 = pnand %p3164_p13, %p3161_p12 }
  0x60   :  { %3169 = shalt.err (!%p3166_p0)
}
  0x61   :  { %s3170_s3 = scalar_lea.vmem %s82_s30, 2048  ;;  %p3175_p2 = scmp.lt.s32.totalorder %s82_s30, %s82_s30 }
  0x62   :  { %p3171_p1 = scmp.ne.s32.totalorder %s82_s30, %s3170_s3  ;;  %p3176_p3 = scmp.lt.s32.totalorder %s3170_s3, %s3170_s3 }
  0x64   :  { %p3177_p4 = por %p3176_p3, %p3175_p2 }
  0x66   :  { %p3178_p5 = pnand %p3177_p4, %p3171_p1 }
  0x68   :  { %3181 = shalt.err (!%p3178_p5)
}
  0x69   :  { %87 = dma.hbm_to_vmem [thread:$0]  %s4231_s5, 2048, %s82_s30, [#allocation9], %s4242_s1, %s4242_s1, %s3312_s17  }
  0x6a   :  { %s3182_s29 = scalar_lea.hbm %s4233_s7, 2048 }
  0x6b   :  { %p3183_p6 = scmp.ne.s32.totalorder %s4233_s7, %s3182_s29  ;;  %p3186_p7 = scmp.lt.u32.totalorder %s3182_s29, %s4233_s7 }
  0x6d   :  { %p3188_p8 = pnand %p3186_p7, %p3183_p6 }
  0x6f   :  { %3191 = shalt.err (!%p3188_p8)
}
  0x70   :  { %s3192_s6 = scalar_lea.vmem %s106_s15, 2048  ;;  %p3197_p10 = scmp.lt.s32.totalorder %s106_s15, %s106_s15 }
  0x71   :  { %p3193_p9 = scmp.ne.s32.totalorder %s106_s15, %s3192_s6  ;;  %p3198_p11 = scmp.lt.s32.totalorder %s3192_s6, %s3192_s6 }
  0x73   :  { %p3199_p12 = por %p3198_p11, %p3197_p10 }
  0x75   :  { %p3200_p13 = pnand %p3199_p12, %p3193_p9 }
  0x77   :  { %3203 = shalt.err (!%p3200_p13)
}
  0x78   :  { %111 = dma.hbm_to_vmem [thread:$0]  %s4233_s7, 2048, %s106_s15, [#allocation12], %s4242_s1, %s4242_s1, %s3312_s17  }
  0x79   :  { %s3319_s25 = smov [#allocation14]   ;;  %s3204_s2 = scalar_lea.hbm %s4234_s8, 2048 }
  0x7a   :  { %s117_s4 = sshll.u32 %s3319_s25, 4  ;;  %p3205_p0 = scmp.ne.s32.totalorder %s4234_s8, %s3204_s2  ;;  %s118_s4 = int_to_ptr.vmem [resolvable:$true] %s117_s4 }
  0x7b   :  { %p3208_p1 = scmp.lt.u32.totalorder %s3204_s2, %s4234_s8 }
  0x7d   :  { %p3210_p2 = pnand %p3208_p1, %p3205_p0 }
  0x7f   :  { %3213 = shalt.err (!%p3210_p2)
}
  0x80   :  { %s3214_s27 = scalar_lea.vmem %s118_s4, 2048  ;;  %p3219_p4 = scmp.lt.s32.totalorder %s118_s4, %s118_s4 }
  0x81   :  { %p3215_p3 = scmp.ne.s32.totalorder %s118_s4, %s3214_s27  ;;  %p3220_p5 = scmp.lt.s32.totalorder %s3214_s27, %s3214_s27 }
  0x83   :  { %p3221_p6 = por %p3220_p5, %p3219_p4 }
  0x85   :  { %p3222_p7 = pnand %p3221_p6, %p3215_p3 }
  0x87   :  { %3225 = shalt.err (!%p3222_p7)
}
  0x88   :  { %123 = dma.hbm_to_vmem [thread:$0]  %s4234_s8, 2048, %s118_s4, [#allocation15], %s4242_s1, %s4242_s1, %s3312_s17  }
  0x89   :  { %3292 = dma.done.wait [#allocation3], 512  }
  0x8a   :  { %3293 = vsyncadd [#allocation3], 4294966784 }
  0x8b   :  { %3294 = dma.done.wait [#allocation6], 2560  }
  0x8c   :  { %3295 = vsyncadd [#allocation6], 4294964736 }
  0x8d   :  { %3296 = dma.done.wait [#allocation9], 4096  }
  0x8e   :  { %3297 = vsyncadd [#allocation9], 4294963200 }
  0x8f   :  { %3298 = dma.done.wait [#allocation12], 6144  }
  0x90   :  { %3299 = vsyncadd [#allocation12], 4294961152 }
  0x91   :  { %3300 = dma.done.wait [#allocation15], 2048  }
  0x92   :  { %3301 = vsyncadd [#allocation15], 4294965248  ;;  %v3320_v0 = vmov 0   ;;  %v2868_v1 = vld [vmem:[#allocation7 + $0x4] ss:$8 sps:$4 sm:$0xff]   ;;  %v238_v18 = vlaneseq  ;;  %vm349_vm0 = vcmask 1041409  }
  0x93   :  { %483 = vmatprep.mubr.bf16.mxu0 %v3320_v0  ;;  %760 = vmatprep.mubr.bf16.mxu1 %v3320_v0  ;;  %v2870_v2 = vld [vmem:[#allocation8 + $0x4] ss:$8 sps:$4 sm:$0xff]   ;;  %v2872_v3 = vld [vmem:[#allocation7] ss:$8 sps:$4 sm:$0xff]   ;;  %v2874_v5 = vld [vmem:[#allocation7 + $0x14] ss:$8 sps:$4 sm:$0xff]  }
  0x94   :  { %2867 = vset.pattern.permute.xlu0 %v3320_v0  ;;  %2866 = vset.pattern.permute.xlu1 %v3320_v0  ;;  %v2873_v4 = vld [vmem:[#allocation8] ss:$8 sps:$4 sm:$0xff]   ;;  %v2876_v6 = vld [vmem:[#allocation8 + $0x14] ss:$8 sps:$4 sm:$0xff]   ;;  %v2878_v7 = vld [vmem:[#allocation7 + $0x10] ss:$8 sps:$4 sm:$0xff]  }
  0x95   :  { %451 = vmatprep.subr.bf16.mxu0 %v2868_v1  ;;  %728 = vmatprep.subr.bf16.mxu1 %v2870_v2  ;;  %v2879_v8 = vld [vmem:[#allocation8 + $0x10] ss:$8 sps:$4 sm:$0xff]   ;;  %v2880_v9 = vld [vmem:[#allocation7 + $0x24] ss:$8 sps:$4 sm:$0xff]   ;;  %v2884_v11 = vld [vmem:[#allocation7 + $0x20] ss:$8 sps:$4 sm:$0xff]  }
  0x96   :  { %452 = vmatpush1.bf16.msra.mxu0 %v2872_v3  ;;  %729 = vmatpush1.bf16.msra.mxu1 %v2873_v4  ;;  %v2882_v10 = vld [vmem:[#allocation8 + $0x24] ss:$8 sps:$4 sm:$0xff]   ;;  %v2885_v12 = vld [vmem:[#allocation8 + $0x20] ss:$8 sps:$4 sm:$0xff]   ;;  %v2886_v13 = vld [vmem:[#allocation7 + $0x34] ss:$8 sps:$4 sm:$0xff]  }
  0x97   :  { %453 = vmatprep.subr.bf16.mxu0 %v2874_v5  ;;  %730 = vmatprep.subr.bf16.mxu1 %v2876_v6  ;;  %v2888_v14 = vld [vmem:[#allocation8 + $0x34] ss:$8 sps:$4 sm:$0xff]   ;;  %v2890_v15 = vld [vmem:[#allocation7 + $0x30] ss:$8 sps:$4 sm:$0xff]   ;;  %v3321_v16 = vmov 1966171168  }
  0x98   :  { %v236_v17 = vunpack.c.l.s4 %v3321_v16  ;;  %v2891_v19 = vld [vmem:[#allocation8 + $0x30] ss:$8 sps:$4 sm:$0xff]   ;;  %v2892_v20 = vld [vmem:[#allocation7 + $0x44] ss:$8 sps:$4 sm:$0xff]   ;;  %v2896_v22 = vld [vmem:[#allocation7 + $0x40] ss:$8 sps:$4 sm:$0xff]  }
  0x99   :  { %v2894_v21 = vld [vmem:[#allocation8 + $0x44] ss:$8 sps:$4 sm:$0xff]   ;;  %v2897_v23 = vld [vmem:[#allocation8 + $0x40] ss:$8 sps:$4 sm:$0xff]   ;;  %v3522_v25 = vshrl.u32 %v238_v18, 7  ;;  %vm352_vm1 = vcmask 1042434  }
  0x9a   :  { %454 = vmatpush1.bf16.msra.mxu0 %v2878_v7  ;;  %731 = vmatpush1.bf16.msra.mxu1 %v2879_v8  ;;  %v237_v24 = vunpack.c.0.s8 %v236_v17  ;;  %v2898_v26 = vld [vmem:[#allocation7 + $0x54] ss:$8 sps:$4 sm:$0xff]   ;;  %v2902_v28 = vld [vmem:[#allocation7 + $0x50] ss:$8 sps:$4 sm:$0xff]   ;;  %v2904_v31 = vld [vmem:[#allocation7 + $0x64] ss:$8 sps:$4 sm:$0xff]  }
  0x9b   :  { %455 = vmatprep.subr.bf16.mxu0 %v2880_v9  ;;  %732 = vmatprep.subr.bf16.mxu1 %v2882_v10  ;;  %v2900_v27 = vld [vmem:[#allocation8 + $0x54] ss:$8 sps:$4 sm:$0xff]   ;;  %v2903_v30 = vld [vmem:[#allocation8 + $0x50] ss:$8 sps:$4 sm:$0xff]   ;;  %vm355_vm2 = vcmask 1043459   ;;  %vm358_vm3 = vcmask 1044484  }
  0x9c   :  { %v3525_v29 = vsub.s32 %v237_v24, %v3522_v25  ;;  %v2906_v32 = vld [vmem:[#allocation8 + $0x64] ss:$8 sps:$4 sm:$0xff]   ;;  %v2550_v33 = vld.sshfl [vmem:[%s4226_s0] sm:$0x1 pattern:$0x75316420] }
  0x9d   :  { %v2908_v34 = vld [vmem:[#allocation7 + $0x60] ss:$8 sps:$4 sm:$0xff]   ;;  %vm361_vm4 = vcmask 1045509   ;;  %v2910_v40 = vld [vmem:[#allocation7 + $0x74] ss:$8 sps:$4 sm:$0xff]   ;;  %vm364_vm5 = vcmask 1046534  }
  0x9e   :  { %456 = vmatpush1.bf16.msra.mxu0 %v2884_v11  ;;  %733 = vmatpush1.bf16.msra.mxu1 %v2885_v12  ;;  %v2909_v35 = vld [vmem:[#allocation8 + $0x60] ss:$8 sps:$4 sm:$0xff]   ;;  %v241_v37 = vrot.slane %v2550_v33, %v3525_v29  ;;  %v2912_v43 = vld [vmem:[#allocation8 + $0x74] ss:$8 sps:$4 sm:$0xff]   ;;  %v2914_v48 = vld [vmem:[#allocation7 + $0x70] ss:$8 sps:$4 sm:$0xff]  }
  0x9f   :  { %457 = vmatprep.subr.bf16.mxu0 %v2886_v13  ;;  %734 = vmatprep.subr.bf16.mxu1 %v2888_v14  ;;  %v2551_v36 = vld.sshfl [vmem:[%s4226_s0 + $0x1] sm:$0x1 pattern:$0x75316420]  ;;  %v2915_v49 = vld [vmem:[#allocation8 + $0x70] ss:$8 sps:$4 sm:$0xff]  }
  0xa0   :  { %v2552_v38 = vld.sshfl [vmem:[%s4226_s0 + $0x2] sm:$0x1 pattern:$0x75316420]  ;;  %v255_v39 = vrot.slane %v2551_v36, %v3525_v29  ;;  %v340_v46 = vunpack.c.l.b16 %v241_v37  ;;  %v164_v53 = vld [vmem:[#allocation2] sm:$0xff]   ;;  %vm367_vm6 = vcmask 1047559  }
  0xa1   :  { %v2553_v41 = vld.sshfl [vmem:[%s4226_s0 + $0x3] sm:$0x1 pattern:$0x75316420]  ;;  %v269_v42 = vrot.slane %v2552_v38, %v3525_v29  ;;  %v2919_v3 = vld [vmem:[#allocation10 + $0x4] ss:$8 sps:$4 sm:$0xff]  }
  0xa2   :  { %458 = vmatpush1.bf16.msra.mxu0 %v2890_v15  ;;  %735 = vmatpush1.bf16.msra.mxu1 %v2891_v19  ;;  %v2554_v44 = vld.sshfl [vmem:[%s4226_s0 + $0x4] sm:$0x1 pattern:$0x75316420]  ;;  %v283_v45 = vrot.slane %v2553_v41, %v3525_v29  ;;  %v341_v47 = vunpack.c.l.b16 %v255_v39  ;;  %v2917_v15 = vld [vmem:[#allocation10] ss:$8 sps:$4 sm:$0xff]  }
  0xa3   :  { %459 = vmatprep.subr.bf16.mxu0 %v2892_v20  ;;  %736 = vmatprep.subr.bf16.mxu1 %v2894_v21  ;;  %v2555_v50 = vld.sshfl [vmem:[%s4226_s0 + $0x5] sm:$0x1 pattern:$0x75316420]  ;;  %v297_v51 = vrot.slane %v2554_v44, %v3525_v29  ;;  %v342_v52 = vunpack.c.l.b16 %v269_v42  ;;  %v2922_v20 = vld [vmem:[#allocation10 + $0x14] ss:$8 sps:$4 sm:$0xff]  }
  0xa4   :  { %v2556_v54 = vld.sshfl [vmem:[%s4226_s0 + $0x6] sm:$0x1 pattern:$0x75316420]  ;;  %v311_v55 = vrot.slane %v2555_v50, %v3525_v29  ;;  %v343_v56 = vunpack.c.l.b16 %v283_v45  ;;  %v348_v57 = vrot.slane %v341_v47, 7  ;;  %v180_v41 = vld [vmem:[#allocation5] sm:$0xff]  }
  0xa5   :  { %v2557_v58 = vld.sshfl [vmem:[%s4226_s0 + $0x7] sm:$0x1 pattern:$0x75316420]  ;;  %v325_v59 = vrot.slane %v2556_v54, %v3525_v29  ;;  %v344_v60 = vunpack.c.l.b16 %v297_v51  ;;  %v351_v61 = vrot.slane %v342_v52, 6  ;;  %v186_v44 = vld [vmem:[#allocation5 + $0x18] sm:$0xff]  }
  0xa6   :  { %460 = vmatpush1.bf16.msra.mxu0 %v2896_v22  ;;  %737 = vmatpush1.bf16.msra.mxu1 %v2897_v23  ;;  %v339_v62 = vrot.slane %v2557_v58, %v3525_v29  ;;  %v345_v63 = vunpack.c.l.b16 %v311_v55  ;;  %v350_v1 = vsel %vm349_vm0, %v348_v57, %v340_v46  ;;  %v354_v2 = vrot.slane %v343_v56, 5  ;;  %v166_v17 = vld [vmem:[#allocation2 + $0x8] sm:$0xff]   ;;  %v2920_v21 = vld [vmem:[#allocation10 + $0x10] ss:$8 sps:$4 sm:$0xff]   ;;  %v1162_v22 = vld [vmem:[#allocation13] sm:$0xff]  ;;  %s3325_s25 = smov [#allocation16]  }
  0xa7   :  { %461 = vmatprep.subr.bf16.mxu0 %v2898_v26  ;;  %738 = vmatprep.subr.bf16.mxu1 %v2900_v27  ;;  %v346_v4 = vunpack.c.l.b16 %v325_v59  ;;  %v353_v5 = vsel %vm352_vm1, %v351_v61, %v350_v1  ;;  %v357_v6 = vrot.slane %v344_v60, 4  ;;  %v1163_v23 = vld [vmem:[#allocation13 + $0x8] sm:$0xff]  ;;  %v2934_v36 = vld [vmem:[#allocation10 + $0x50] ss:$8 sps:$4 sm:$0xff]   ;;  %v2943_v39 = vld [vmem:[#allocation10 + $0x74] ss:$8 sps:$4 sm:$0xff]  }
  0xa8   :  { %v347_v7 = vunpack.c.l.b16 %v339_v62  ;;  %v356_v8 = vsel %vm355_vm2, %v354_v2, %v353_v5  ;;  %v360_v9 = vrot.slane %v345_v63, 3  ;;  %v2926_v24 = vld [vmem:[#allocation10 + $0x24] ss:$8 sps:$4 sm:$0xff]   ;;  %v2755_v26 = vpack.c.bf16 %v1163_v23, %v1162_v22  ;;  %v2924_v27 = vld [vmem:[#allocation10 + $0x20] ss:$8 sps:$4 sm:$0xff]   ;;  %v1164_v45 = vld [vmem:[#allocation13 + $0x10] sm:$0xff] }
  0xa9   :  { %v359_v10 = vsel %vm358_vm3, %v357_v6, %v356_v8  ;;  %v363_v11 = vrot.slane %v346_v4, 2  ;;  %v2931_v33 = vld [vmem:[#allocation10 + $0x40] ss:$8 sps:$4 sm:$0xff]   ;;  %v2940_v37 = vld [vmem:[#allocation10 + $0x64] ss:$8 sps:$4 sm:$0xff]   ;;  %v1165_v46 = vld [vmem:[#allocation13 + $0x18] sm:$0xff] }
  0xaa   :  { %462 = vmatpush1.bf16.msra.mxu0 %v2902_v28  ;;  %739 = vmatpush1.bf16.msra.mxu1 %v2903_v30  ;;  %v362_v12 = vsel %vm361_vm4, %v360_v9, %v359_v10  ;;  %v366_v13 = vrot.slane %v347_v7, 1  ;;  %v2929_v28 = vld [vmem:[#allocation10 + $0x34] ss:$8 sps:$4 sm:$0xff]   ;;  %v2938_v38 = vld [vmem:[#allocation10 + $0x60] ss:$8 sps:$4 sm:$0xff]   ;;  %v2759_v47 = vpack.c.bf16 %v1165_v46, %v1164_v45  ;;  %s2503_s4 = sshll.u32 %s3325_s25, 4  ;;  %s2504_s4 = int_to_ptr.vmem [resolvable:$true] %s2503_s4 }
  0xab   :  { %463 = vmatprep.subr.bf16.mxu0 %v2904_v31  ;;  %740 = vmatprep.subr.bf16.mxu1 %v2906_v32  ;;  %v365_v14 = vsel %vm364_vm5, %v363_v11, %v362_v12  ;;  %v168_v30 = vld [vmem:[#allocation2 + $0x10] sm:$0xff]   ;;  %v2933_v32 = vld [vmem:[#allocation10 + $0x44] ss:$8 sps:$4 sm:$0xff]   ;;  %v1169_v52 = vld [vmem:[#allocation13 + $0x38] sm:$0xff]  ;;  %s3226_s16 = scalar_lea.vmem %s2504_s4, 128  ;;  %p3231_p9 = scmp.lt.s32.totalorder %s2504_s4, %s2504_s4 }
  0xac   :  { %v368_v16 = vsel %vm367_vm6, %v366_v13, %v365_v14  ;;  %v2927_v31 = vld [vmem:[#allocation10 + $0x30] ss:$8 sps:$4 sm:$0xff]   ;;  %v182_v42 = vld [vmem:[#allocation5 + $0x8] sm:$0xff]   ;;  %v1170_v54 = vld [vmem:[#allocation13 + $0x40] sm:$0xff]  ;;  %p3227_p8 = scmp.ne.s32.totalorder %s2504_s4, %s3226_s16  ;;  %p3232_p10 = scmp.lt.s32.totalorder %s3226_s16, %s3226_s16 }
  0xad   :  { %v369_v19 = vpack.c.b16 %v368_v16, %v368_v16  ;;  %v1168_v51 = vld [vmem:[#allocation13 + $0x30] sm:$0xff]  ;;  %v1171_v55 = vld [vmem:[#allocation13 + $0x48] sm:$0xff]  ;;  %v1173_v57 = vld [vmem:[#allocation13 + $0x58] sm:$0xff] }
  0xae   :  { %464 = vmatpush1.bf16.msra.mxu0 %v2908_v34  ;;  %741 = vmatpush1.bf16.msra.mxu1 %v2909_v35  ;;  %v2936_v34 = vld [vmem:[#allocation10 + $0x54] ss:$8 sps:$4 sm:$0xff]   ;;  %v1174_v59 = vld [vmem:[#allocation13 + $0x60] sm:$0xff]  ;;  %v1175_v60 = vld [vmem:[#allocation13 + $0x68] sm:$0xff]  ;;  %p3233_p11 = por %p3232_p10, %p3231_p9 }
  0xaf   :  { %465 = vmatprep.subr.bf16.mxu0 %v2910_v40  ;;  %742 = vmatprep.subr.bf16.mxu1 %v2912_v43  ;;  %v170_v35 = vld [vmem:[#allocation2 + $0x18] sm:$0xff]   ;;  %v184_v43 = vld [vmem:[#allocation5 + $0x10] sm:$0xff]   ;;  %v2779_v61 = vpack.c.bf16 %v1175_v60, %v1174_v59  ;;  %v3576_v2 = vld [vmem:[%s4236_s10] ss:$0 sm:$0xff] }
  0xb0   :  { %v2941_v40 = vld [vmem:[#allocation10 + $0x70] ss:$8 sps:$4 sm:$0xff]   ;;  %v2574_v4 = vld [vmem:[%s4236_s10 + $0x1] ss:$0 sm:$0xff]  ;;  %p3234_p12 = pnand %p3233_p11, %p3227_p8 }
  0xb1   :  { %v1172_v56 = vld [vmem:[#allocation13 + $0x50] sm:$0xff]  ;;  %v1177_v63 = vld [vmem:[#allocation13 + $0x78] sm:$0xff] }
  0xb2   :  { %466 = vmatpush1.bf16.msra.mxu0 %v2914_v48  ;;  %743 = vmatpush1.bf16.msra.mxu1 %v2915_v49  ;;  %v1166_v48 = vld [vmem:[#allocation13 + $0x20] sm:$0xff]  ;;  %v1167_v49 = vld [vmem:[#allocation13 + $0x28] sm:$0xff]  ;;  %v2775_v58 = vpack.c.bf16 %v1173_v57, %v1172_v56  ;;  %v1176_v62 = vld [vmem:[#allocation13 + $0x70] sm:$0xff] }
  0xb3   :  { %921 = vmatprep.subr.bf16.mxu0 %v2919_v3  ;;  %2756 = vmatprep.subr.bf16.mxu1 %v2755_v26  ;;  %v2763_v50 = vpack.c.bf16 %v1167_v49, %v1166_v48  ;;  %v2783_v1 = vpack.c.bf16 %v1177_v63, %v1176_v62 }
  0xb5   :  { %761 = vmatmul.mubr.bf16.vlgmr.msra.gmra.mrb[0].mxu1 %v164_v53  ;;  %484 = vmatmul.mubr.bf16.vlgmr.msra.gmra.mrb[0].mxu0 %v369_v19  ;;  %v2767_v53 = vpack.c.bf16 %v1169_v52, %v1168_v51  ;;  %v3628_v51 = vsub.s32 0, %v3522_v25 }
  0xb6   :  { %770 = vmatprep.mubr.bf16.mxu1 %v3320_v0  ;;  %922 = vmatpush1.bf16.msra.mxu0 %v2917_v15 }
  0xb7   :  { %953 = vmatprep.mubr.bf16.mxu0 %v3320_v0  ;;  %923 = vmatprep.subr.bf16.mxu0 %v2922_v20 }
  0xb8   :  { %2758 = vmatpush3.bf16.msra.mxu1 %v2755_v26 }
  0xb9   :  { %2760 = vmatprep.subr.bf16.mxu1 %v2759_v47 }
  0xba   :  { %924 = vmatpush1.bf16.msra.mxu0 %v2920_v21 }
  0xbb   :  { %925 = vmatprep.subr.bf16.mxu0 %v2926_v24 }
  0xbc   :  { %2762 = vmatpush3.bf16.msra.mxu1 %v2759_v47 }
  0xbd   :  { %771 = vmatmul.mubr.bf16.gmra.mrb[4].mxu1 %v166_v17  ;;  %2764 = vmatprep.subr.bf16.mxu1 %v2763_v50 }
  0xbe   :  { %780 = vmatprep.mubr.bf16.mxu1 %v3320_v0  ;;  %926 = vmatpush1.bf16.msra.mxu0 %v2924_v27 }
  0xbf   :  { %927 = vmatprep.subr.bf16.mxu0 %v2929_v28 }
  0xc0   :  { %2766 = vmatpush3.bf16.msra.mxu1 %v2763_v50 }
  0xc1   :  { %2768 = vmatprep.subr.bf16.mxu1 %v2767_v53 }
  0xc2   :  { %928 = vmatpush1.bf16.msra.mxu0 %v2927_v31  ;;  %v2576_v31 = vld [vmem:[%s4236_s10 + $0x3] ss:$0 sm:$0xff] }
  0xc3   :  { %929 = vmatprep.subr.bf16.mxu0 %v2933_v32 }
  0xc4   :  { %2770 = vmatpush3.bf16.msra.mxu1 %v2767_v53 }
  0xc5   :  { %781 = vmatmul.mubr.bf16.gmra.mrb[8].mxu1 %v168_v30 }
  0xc6   :  { %790 = vmatprep.mubr.bf16.mxu1 %v3320_v0  ;;  %930 = vmatpush1.bf16.msra.mxu0 %v2931_v33 }
  0xc7   :  { %931 = vmatprep.subr.bf16.mxu0 %v2936_v34 }
  0xca   :  { %932 = vmatpush1.bf16.msra.mxu0 %v2934_v36 }
  0xcb   :  { %933 = vmatprep.subr.bf16.mxu0 %v2940_v37 }
  0xcd   :  { %791 = vmatmul.mubr.bf16.gmra.mrb[12].mxu1 %v170_v35 }
  0xce   :  { %934 = vmatpush1.bf16.msra.mxu0 %v2938_v38 }
  0xcf   :  { %935 = vmatprep.subr.bf16.mxu0 %v2943_v39 }
  0xd2   :  { %936 = vmatpush1.bf16.msra.mxu0 %v2941_v40 }
  0xd5   :  { %954 = vmatmul.mubr.bf16.vlgmr.msra.gmra.mrb[4].mxu0 %v180_v41 }
  0xd6   :  { %963 = vmatprep.mubr.bf16.mxu0 %v3320_v0 }
  0xdd   :  { %964 = vmatmul.mubr.bf16.gmra.mrb[8].mxu0 %v182_v42 }
  0xde   :  { %973 = vmatprep.mubr.bf16.mxu0 %v3320_v0 }
  0xe5   :  { %974 = vmatmul.mubr.bf16.gmra.mrb[12].mxu0 %v184_v43 }
  0xe6   :  { %983 = vmatprep.mubr.bf16.mxu0 %v3320_v0  ;;  %v2771_v0 = vpack.c.bf16 %v1171_v55, %v1170_v54 }
  0xe8   :  { %2772 = vmatprep.subr.bf16.mxu1 %v2771_v0 }
  0xe9   :  { %2774 = vmatpush3.bf16.msra.mxu1 %v2771_v0 }
  0xea   :  { %2776 = vmatprep.subr.bf16.mxu1 %v2775_v58 }
  0xed   :  { %984 = vmatmul.mubr.bf16.gmra.mrb[16].mxu0 %v186_v44  ;;  %2778 = vmatpush3.bf16.msra.mxu1 %v2775_v58 }
  0xee   :  { %2780 = vmatprep.subr.bf16.mxu1 %v2779_v61 }
  0xf1   :  { %2782 = vmatpush3.bf16.msra.mxu1 %v2779_v61 }
  0xf2   :  { %2784 = vmatprep.subr.bf16.mxu1 %v2783_v1 }
  0xf5   :  { %2786 = vmatpush3.bf16.msra.mxu1 %v2783_v1 }
 0x188   :  { %v762_v3 = vpop.f32.mrb[0].mxu1  ;;  %v485_v8 = vpop.f32.mrb[0].mxu0 }
 0x189   :  { %v3582_v5 = vadd.f32 %v3576_v2, %v762_v3  ;;  %v3584_v6 = vpop.f32.mrb[1].mxu1  ;;  %v496_v12 = vadd.f32 %v2574_v4, %v485_v8  ;;  %v487_v13 = vpop.f32.mrb[1].mxu0 }
 0x18a   :  { %v766_v7 = vpop.f32.mrb[2].mxu1  ;;  %v489_v16 = vpop.f32.mrb[2].mxu0  ;;  %v3608_v35 = vadd.f32 %v2576_v31, %v487_v13 }
 0x18b   :  { %v1014_v9 = vmin.f32 %v3582_v5, 0.0  ;;  %v3588_v10 = vadd.f32 %v3576_v2, %v766_v7  ;;  %v3590_v11 = vpop.f32.mrb[3].mxu1  ;;  %v498_v17 = vmin.f32 %v496_v12, 0.0  ;;  %v490_v19 = vpop.f32.mrb[3].mxu0  ;;  %vm497_vm7 = vcmp.gt.f32.partialorder %v496_v12, 0.0 }
 0x18c   :  { %v3623_v45 = vrot.slane %v3608_v35, %v3525_v29  ;;  %vm1006_vm8 = vcmp.gt.f32.partialorder %v3582_v5, 0.0 }
 0x18d   :  { %v1022_v14 = vmul.f32 1.442695, %v1014_v9  ;;  %v1015_v15 = vmin.f32 %v3588_v10, 0.0  ;;  %v499_v20 = vmul.f32 1.442695, %v498_v17  ;;  %vm1007_vm9 = vcmp.gt.f32.partialorder %v3588_v10, 0.0 }
 0x18e   :  { %v574_v0 = vcombine.high %v3623_v45, %v3623_v45  ;;  %v3636_v56 = vrot.slane %v3623_v45, %v3525_v29 }
 0x18f   :  { %v1024_v21 = vmul.f32 1.442695, %v1015_v15  ;;  %2956 = vpow2.f32 %v1022_v14 }
 0x190   :  { %v772_v22 = vpop.f32.mrb[4].mxu1  ;;  %2958 = vpow2.f32 %v499_v20  ;;  %v596_v45 = vrot.slane %v574_v0, %v3525_v29 }
 0x191   :  { %v3593_v23 = vpop.f32.mrb[5].mxu1  ;;  %v3596_v24 = vadd.f32 %v3576_v2, %v772_v22  ;;  %2960 = vpow2.f32 %v1024_v21 }
 0x192   :  { %v776_v26 = vpop.f32.mrb[6].mxu1 }
 0x193   :  { %v3599_v27 = vadd.f32 %v3576_v2, %v776_v26  ;;  %v3601_v28 = vpop.f32.mrb[7].mxu1  ;;  %v1016_v30 = vmin.f32 %v3596_v24, 0.0  ;;  %vm1008_vm10 = vcmp.gt.f32.partialorder %v3596_v24, 0.0 }
 0x195   :  { %v1017_v32 = vmin.f32 %v3599_v27, 0.0  ;;  %v1026_v33 = vmul.f32 1.442695, %v1016_v30  ;;  %vm1009_vm11 = vcmp.gt.f32.partialorder %v3599_v27, 0.0 }
 0x197   :  { %v1028_v34 = vmul.f32 1.442695, %v1017_v32  ;;  %2962 = vpow2.f32 %v1026_v33 }
 0x198   :  { %v782_v36 = vpop.f32.mrb[8].mxu1 }
 0x199   :  { %2964 = vpow2.f32 %v1028_v34  ;;  %v3611_v37 = vadd.f32 %v3576_v2, %v782_v36  ;;  %v3613_v38 = vpop.f32.mrb[9].mxu1  ;;  %v2957_v40 = vpop.eup %2956 }
 0x19a   :  { %v786_v39 = vpop.f32.mrb[10].mxu1  ;;  %v2959_v44 = vpop.eup %2958  ;;  %v2618_v50 = vadd.f32 -1.0, %v2957_v40  ;;  %v3675_v40 = vld [vmem:[%s4236_s10 + $0x2] ss:$0 sm:$0xff] }
 0x19b   :  { %v1018_v41 = vmin.f32 %v3611_v37, 0.0  ;;  %v3617_v42 = vadd.f32 %v3576_v2, %v786_v39  ;;  %v3619_v43 = vpop.f32.mrb[11].mxu1  ;;  %v2575_v46 = vadd.f32 -1.0, %v2959_v44  ;;  %v2961_v49 = vpop.eup %2960  ;;  %vm1010_vm12 = vcmp.gt.f32.partialorder %v3611_v37, 0.0 }
 0x19c   :  { %v2619_v58 = vadd.f32 -1.0, %v2961_v49  ;;  %v1046_v3 = vsel %vm1006_vm8, %v3582_v5, %v2618_v50  ;;  %vm1381_vm8 = vcmask 64512  }
 0x19d   :  { %v1030_v47 = vmul.f32 1.442695, %v1018_v41  ;;  %v1019_v48 = vmin.f32 %v3617_v42, 0.0  ;;  %v502_v52 = vsel %vm497_vm7, %v496_v12, %v2575_v46  ;;  %vm1011_vm13 = vcmp.gt.f32.partialorder %v3617_v42, 0.0 }
 0x19e   :  { %v504_v54 = vcombine.high %v502_v52, %v502_v52  ;;  %v511_v55 = vrot.slane %v502_v52, %v3525_v29  ;;  %v1047_v5 = vsel %vm1007_vm9, %v3588_v10, %v2619_v58  ;;  %vm3323_vm7 = vmmov 0  }
 0x19f   :  { %2966 = vpow2.f32 %v1030_v47  ;;  %v1032_v53 = vmul.f32 1.442695, %v1019_v48 }
 0x1a0   :  { %v792_v57 = vpop.f32.mrb[12].mxu1  ;;  %v519_v62 = vcombine.high %v511_v55, %v511_v55  ;;  %v527_v1 = vrot.slane %v511_v55, %v3525_v29  ;;  %v518_v7 = vrot.slane %v504_v54, %v3525_v29  ;;  %v1117_v54 = vrot.slane %v3636_v56, %v3628_v51 }
 0x1a1   :  { %2968 = vpow2.f32 %v1032_v53  ;;  %v3640_v59 = vadd.f32 %v3576_v2, %v792_v57  ;;  %v3642_v60 = vpop.f32.mrb[13].mxu1  ;;  %v2963_v61 = vpop.eup %2962  ;;  %v559_v55 = vcombine.high %v3608_v35, %v3608_v35 }
 0x1a2   :  { %v796_v63 = vpop.f32.mrb[14].mxu1  ;;  %v2620_v8 = vadd.f32 -1.0, %v2963_v61  ;;  %v541_v14 = vrot.slane %v519_v62, %v3525_v29  ;;  %v1057_v16 = vrot.slane %v527_v1, %v3628_v51  ;;  %v549_v17 = vcombine.high %v527_v1, %v527_v1 }
 0x1a3   :  { %v2965_v4 = vpop.eup %2964  ;;  %v1020_v9 = vmin.f32 %v3640_v59, 0.0  ;;  %v3652_v12 = vadd.f32 %v3576_v2, %v796_v63  ;;  %v3654_v13 = vpop.f32.mrb[15].mxu1  ;;  %v534_v10 = vrot.slane %v518_v7, %v3525_v29  ;;  %vm1012_vm14 = vcmp.gt.f32.partialorder %v3640_v59, 0.0 }
 0x1a4   :  { %v2621_v15 = vadd.f32 -1.0, %v2965_v4  ;;  %v1048_v2 = vsel %vm1008_vm10, %v3596_v24, %v2620_v8  ;;  %v1061_v21 = vrot.slane %v541_v14, %v3628_v51  ;;  %v1094_v22 = vmul.f32 %v1057_v16, %v1046_v3 }
 0x1a5   :  { %v1034_v19 = vmul.f32 1.442695, %v1020_v9  ;;  %v1021_v20 = vmin.f32 %v3652_v12, 0.0  ;;  %v1065_v26 = vrot.slane %v549_v17, %v3628_v51  ;;  %v551_v30 = vcombine.high %v541_v14, %v541_v14 }
 0x1a6   :  { %v1049_v32 = vsel %vm1009_vm11, %v3599_v27, %v2621_v15  ;;  %v1095_v33 = vmul.f32 %v1061_v21, %v1047_v5  ;;  %2708 = vmatprep.mubr.f32.mxu1 %v1094_v22  ;;  %v520_v24 = vcombine.high %v518_v7, %v518_v7  ;;  %v1073_v48 = vrot.slane %v534_v10, %v3628_v51 }
 0x1a7   :  { %2970 = vpow2.f32 %v1034_v19  ;;  %v1036_v31 = vmul.f32 1.442695, %v1021_v20  ;;  %v1096_v34 = vmul.f32 %v1065_v26, %v1048_v2  ;;  %v1069_v36 = vrot.slane %v551_v30, %v3628_v51 }
 0x1a8   :  { %2709 = vmatmul.mubr.f32.vlgmr.msra.gmra.mrb[16].mxu1 %v1095_v33  ;;  %v548_v27 = vrot.slane %v520_v24, %v3525_v29  ;;  %v955_v47 = vpop.f32.mrb[4].mxu0  ;;  %v550_v35 = vcombine.high %v534_v10, %v534_v10  ;;  %v604_v7 = vcombine.high %v3636_v56, %v3636_v56  ;;  %v573_v9 = vrot.slane %v559_v55, %v3525_v29 }
 0x1a9   :  { %v2967_v39 = vpop.eup %2966  ;;  %2972 = vpow2.f32 %v1036_v31  ;;  %v1097_v44 = vmul.f32 %v1069_v36, %v1049_v32  ;;  %2711 = vmatprep.mubr.f32.mxu1 %v1096_v34  ;;  %v1106_v50 = vadd.f32 %v3675_v40, %v955_v47  ;;  %v3682_v52 = vpop.f32.mrb[5].mxu0  ;;  %v606_v16 = vcombine.high %v596_v45, %v596_v45 }
 0x1aa   :  { %v2622_v41 = vadd.f32 -1.0, %v2967_v39  ;;  %v959_v0 = vpop.f32.mrb[6].mxu0  ;;  %v1077_v58 = vrot.slane %v548_v27, %v3628_v51  ;;  %v552_v14 = vcombine.high %v548_v27, %v548_v27  ;;  %v1081_v5 = vrot.slane %v550_v35, %v3628_v51 }
 0x1ab   :  { %v2969_v46 = vpop.eup %2968  ;;  %v1107_v61 = vadd.f32 %v3675_v40, %v959_v0  ;;  %v3692_v62 = vpop.f32.mrb[7].mxu0  ;;  %v3696_v1 = vmul.f32 %v1117_v54, %v1106_v50  ;;  %v1125_v21 = vrot.slane %v604_v7, %v3628_v51  ;;  %v575_v22 = vcombine.high %v573_v9, %v573_v9 }
 0x1ac   :  { %v2623_v49 = vadd.f32 -1.0, %v2969_v46  ;;  %v1050_v53 = vsel %vm1010_vm12, %v3611_v37, %v2622_v41  ;;  %2712 = vmatmul.mubr.f32.gmra.mrb[18].mxu1 %v1097_v44  ;;  %v1121_v37 = vrot.slane %v596_v45, %v3628_v51  ;;  %vm1013_vm15 = vcmp.gt.f32.partialorder %v3652_v12, 0.0 }
 0x1ad   :  { %v1098_v57 = vmul.f32 %v1073_v48, %v1050_v53  ;;  %v1085_v31 = vrot.slane %v552_v14, %v3628_v51  ;;  %v1129_v36 = vrot.slane %v606_v16, %v3628_v51  ;;  %v589_v39 = vrot.slane %v573_v9, %v3525_v29  ;;  %v1640_v9 = vld [vmem:[#allocation14 + $0x8] sm:$0xff]  ;;  %v1641_v16 = vld [vmem:[#allocation14 + $0x10] sm:$0xff] }
 0x1ae   :  { %v1051_v63 = vsel %vm1011_vm13, %v3617_v42, %v2623_v49  ;;  %v3698_v4 = vmul.f32 %v1121_v37, %v1107_v61  ;;  %v603_v41 = vrot.slane %v575_v22, %v3525_v29  ;;  %v1647_v22 = vld [vmem:[#allocation14 + $0x40] sm:$0xff] }
 0x1af   :  { %2714 = vmatprep.mubr.f32.mxu1 %v1098_v57  ;;  %v1099_v3 = vmul.f32 %v1077_v58, %v1051_v63  ;;  %v605_v54 = vcombine.high %v589_v39, %v589_v39 }
 0x1b0   :  { %v965_v17 = vpop.f32.mrb[8].mxu0  ;;  %v1137_v50 = vrot.slane %v603_v41, %v3628_v51  ;;  %v607_v55 = vcombine.high %v603_v41, %v603_v41  ;;  %v3324_v41 = vmov 0.0  }
 0x1b1   :  { %v2971_v8 = vpop.eup %2970  ;;  %2715 = vmatmul.mubr.f32.gmra.mrb[20].mxu1 %v1099_v3  ;;  %v1108_v20 = vadd.f32 %v3675_v40, %v965_v17  ;;  %v3706_v2 = vpop.f32.mrb[9].mxu0  ;;  %v1141_v61 = vrot.slane %v605_v54, %v3628_v51  ;;  %2752 = vmatprep.mubr.msk.f32.mxu0 %vm3323_vm7, %v3324_v41 }
 0x1b2   :  { %v2624_v15 = vadd.f32 -1.0, %v2971_v8  ;;  %v969_v26 = vpop.f32.mrb[10].mxu0  ;;  %v1145_v35 = vrot.slane %v607_v55, %v3628_v51  ;;  %v1639_v8 = vld [vmem:[#allocation14] sm:$0xff] }
 0x1b3   :  { %v2973_v42 = vpop.eup %2972  ;;  %v1109_v32 = vadd.f32 %v3675_v40, %v969_v26  ;;  %v3713_v10 = vpop.f32.mrb[11].mxu0  ;;  %v3716_v34 = vmul.f32 %v1125_v21, %v1108_v20  ;;  %v2788_v14 = vpack.c.bf16 %v1640_v9, %v1639_v8  ;;  %v1645_v20 = vld [vmem:[#allocation14 + $0x30] sm:$0xff]  ;;  %v1648_v26 = vld [vmem:[#allocation14 + $0x48] sm:$0xff] }
 0x1b4   :  { %v2625_v19 = vadd.f32 -1.0, %v2973_v42  ;;  %v1052_v56 = vsel %vm1012_vm14, %v3640_v59, %v2624_v15  ;;  %v3322_v15 = vmov 0.0|0.0   ;;  %v1642_v42 = vld [vmem:[#allocation14 + $0x18] sm:$0xff] }
 0x1b5   :  { %v1100_v30 = vmul.f32 %v1081_v5, %v1052_v56  ;;  %v3719_v24 = vmul.f32 %v1129_v36, %v1109_v32  ;;  %2787 = vmatprep.subr.bf16.mxu0 %v3322_v15  ;;  %v2791_v17 = vpack.c.bf16 %v1642_v42, %v1641_v16  ;;  %v1643_v5 = vld [vmem:[#allocation14 + $0x20] sm:$0xff]  ;;  %v1646_v56 = vld [vmem:[#allocation14 + $0x38] sm:$0xff] }
 0x1b6   :  { %v1053_v33 = vsel %vm1013_vm15, %v3652_v12, %v2625_v19  ;;  %v1133_v12 = vrot.slane %v589_v39, %v3628_v51  ;;  %2789 = vmatpush3.bf16.msra.mxu0 %v2788_v14  ;;  %v2797_v21 = vpack.c.bf16 %v1646_v56, %v1645_v20  ;;  %v1650_v32 = vld [vmem:[#allocation14 + $0x58] sm:$0xff]  ;;  %v1651_v36 = vld [vmem:[#allocation14 + $0x60] sm:$0xff] }
 0x1b7   :  { %2717 = vmatprep.mubr.f32.mxu1 %v1100_v30  ;;  %v1101_v59 = vmul.f32 %v1085_v31, %v1053_v33  ;;  %2790 = vmatprep.subr.bf16.mxu0 %v3322_v15  ;;  %v2800_v30 = vpack.c.bf16 %v1648_v26, %v1647_v22  ;;  %v1649_v31 = vld [vmem:[#allocation14 + $0x50] sm:$0xff] }
 0x1b8   :  { %v975_v44 = vpop.f32.mrb[12].mxu0  ;;  %v2803_v33 = vpack.c.bf16 %v1650_v32, %v1649_v31 }
 0x1b9   :  { %2718 = vmatmul.mubr.f32.gmra.mrb[22].mxu1 %v1101_v59  ;;  %v1110_v27 = vadd.f32 %v3675_v40, %v975_v44  ;;  %v3724_v45 = vpop.f32.mrb[13].mxu0  ;;  %v1652_v59 = vld [vmem:[#allocation14 + $0x68] sm:$0xff]  ;;  %v1653_v44 = vld [vmem:[#allocation14 + $0x70] sm:$0xff] }
 0x1ba   :  { %v979_v46 = vpop.f32.mrb[14].mxu0  ;;  %2792 = vmatpush3.bf16.msra.mxu0 %v2791_v17  ;;  %v2806_v39 = vpack.c.bf16 %v1652_v59, %v1651_v36  ;;  %2006 = vmatprep.mubr.f32.mxu1 %v3324_v41 }
 0x1bb   :  { %v1111_v47 = vadd.f32 %v3675_v40, %v979_v46  ;;  %v3728_v48 = vpop.f32.mrb[15].mxu0  ;;  %v3730_v49 = vmul.f32 %v1133_v12, %v1110_v27  ;;  %2793 = vmatprep.subr.bf16.mxu0 %v3322_v15  ;;  %v1654_v27 = vld [vmem:[#allocation14 + $0x78] sm:$0xff]  ;;  %v2627_v46 = vld [vmem:[%s4235_s9] ss:$0 sm:$0xff] }
 0x1bc   :  { %v2809_v12 = vpack.c.bf16 %v1654_v27, %v1653_v44 }
 0x1bd   :  { %v3733_v53 = vmul.f32 %v1137_v50, %v1111_v47 }
 0x1c0   :  { %v985_v0 = vpop.f32.mrb[16].mxu0 }
 0x1c1   :  { %v1112_v57 = vadd.f32 %v3675_v40, %v985_v0  ;;  %v3736_v58 = vpop.f32.mrb[17].mxu0  ;;  %v3751_v0 = vld [vmem:[%s4235_s9 + $0x1] ss:$0 sm:$0xff] }
 0x1c2   :  { %v989_v63 = vpop.f32.mrb[18].mxu0 }
 0x1c3   :  { %v1113_v37 = vadd.f32 %v3675_v40, %v989_v63  ;;  %v3740_v3 = vmul.f32 %v1141_v61, %v1112_v57  ;;  %v1644_v40 = vld [vmem:[#allocation14 + $0x28] sm:$0xff] }
 0x1c4   :  { %v2794_v19 = vpack.c.bf16 %v1644_v40, %v1643_v5 }
 0x1c5   :  { %v3743_v7 = vmul.f32 %v1145_v35, %v1113_v37 }
 0x1c6   :  { %2795 = vmatpush3.bf16.msra.mxu0 %v2794_v19 }
 0x1c7   :  { %2796 = vmatprep.subr.bf16.mxu0 %v3322_v15 }
 0x1ca   :  { %2798 = vmatpush3.bf16.msra.mxu0 %v2797_v21 }
 0x1cb   :  { %2799 = vmatprep.subr.bf16.mxu0 %v3322_v15 }
 0x1ce   :  { %2801 = vmatpush3.bf16.msra.mxu0 %v2800_v30 }
 0x1cf   :  { %2802 = vmatprep.subr.bf16.mxu0 %v3322_v15 }
 0x1d2   :  { %2804 = vmatpush3.bf16.msra.mxu0 %v2803_v33 }
 0x1d3   :  { %2805 = vmatprep.subr.bf16.mxu0 %v3322_v15 }
 0x1d6   :  { %2807 = vmatpush3.bf16.msra.mxu0 %v2806_v39 }
 0x1d7   :  { %2808 = vmatprep.subr.bf16.mxu0 %v3322_v15 }
 0x1da   :  { %2810 = vmatpush3.bf16.msra.mxu0 %v2809_v12 }
 0x27b   :  { %v2710_v47 = vpop.f32.mrb[16].mxu1 }
 0x27c   :  { %v1288_v50 = vadd.f32 %v2710_v47, %v2627_v46  ;;  %v1244_v54 = vpop.f32.mrb[17].mxu1 }
 0x27d   :  { %v1287_v55 = vadd.f32 %v2627_v46, %v1244_v54 }
 0x27e   :  { %v1296_v57 = vmax.f32 %v1288_v50, 0.0 }
 0x27f   :  { %v1295_v61 = vmax.f32 %v1287_v55, 0.0  ;;  %v2713_v63 = vpop.f32.mrb[18].mxu1 }
 0x280   :  { %v1588_v37 = vrot.slane %v1296_v57, 4  ;;  %v1290_v35 = vadd.f32 %v2713_v63, %v2627_v46  ;;  %v1254_v8 = vpop.f32.mrb[19].mxu1  ;;  %v1308_v9 = vmul.f32 %v3751_v0, %v1296_v57 }
 0x281   :  { %v1582_v14 = vrot.slane %v1295_v61, 4  ;;  %v1289_v15 = vadd.f32 %v2627_v46, %v1254_v8  ;;  %v1307_v19 = vmul.f32 %v3751_v0, %v1295_v61 }
 0x282   :  { %v1589_v16 = vadd.f32 %v1588_v37, %v1296_v57  ;;  %v1298_v42 = vmax.f32 %v1290_v35, 0.0  ;;  %1317 = vadd.xlane.f32.xlu0 %v1308_v9 }
 0x283   :  { %v1583_v17 = vadd.f32 %v1582_v14, %v1295_v61  ;;  %v1297_v5 = vmax.f32 %v1289_v15, 0.0 }
 0x284   :  { %v2716_v40 = vpop.f32.mrb[20].mxu1  ;;  %v1590_v20 = vrot.slane %v1589_v16, 2  ;;  %v1600_v56 = vrot.slane %v1298_v42, 4  ;;  %v1310_v22 = vmul.f32 %v3751_v0, %v1298_v42 }
 0x285   :  { %v1292_v21 = vadd.f32 %v2716_v40, %v2627_v46  ;;  %v1264_v26 = vpop.f32.mrb[21].mxu1  ;;  %v1584_v30 = vrot.slane %v1583_v17, 2  ;;  %v1594_v31 = vrot.slane %v1297_v5, 4  ;;  %v1309_v50 = vmul.f32 %v3751_v0, %v1297_v5 }
 0x286   :  { %v1291_v32 = vadd.f32 %v2627_v46, %v1264_v26  ;;  %v1591_v33 = vadd.f32 %v1590_v20, %v1589_v16  ;;  %v1601_v36 = vadd.f32 %v1600_v56, %v1298_v42  ;;  %1315 = vadd.xlane.f32.xlu0 %v1307_v19  ;;  %1321 = vadd.xlane.f32.xlu1 %v1310_v22 }
 0x287   :  { %v1300_v59 = vmax.f32 %v1292_v21, 0.0  ;;  %v1585_v39 = vadd.f32 %v1584_v30, %v1583_v17  ;;  %v1595_v41 = vadd.f32 %v1594_v31, %v1297_v5 }
 0x288   :  { %v1299_v44 = vmax.f32 %v1291_v32, 0.0  ;;  %v1592_v27 = vrot.slane %v1591_v33, 1  ;;  %v1602_v12 = vrot.slane %v1601_v36, 2 }
 0x289   :  { %v1612_v47 = vrot.slane %v1300_v59, 4  ;;  %v1586_v54 = vrot.slane %v1585_v39, 1  ;;  %v1596_v55 = vrot.slane %v1595_v41, 2  ;;  %v1312_v9 = vmul.f32 %v3751_v0, %v1300_v59 }
 0x28a   :  { %v1606_v57 = vrot.slane %v1299_v44, 4  ;;  %v1311_v61 = vmul.f32 %v3751_v0, %v1299_v44  ;;  %v1593_v63 = vadd.f32 %v1592_v27, %v1591_v33  ;;  %v1603_v37 = vadd.f32 %v1602_v12, %v1601_v36  ;;  %1319 = vadd.xlane.f32.xlu1 %v1309_v50 }
 0x28b   :  { %v1613_v35 = vadd.f32 %v1612_v47, %v1300_v59  ;;  %v1587_v14 = vadd.f32 %v1586_v54, %v1585_v39  ;;  %v1597_v15 = vadd.f32 %v1596_v55, %v1595_v41 }
 0x28c   :  { %v2719_v8 = vpop.f32.mrb[22].mxu1  ;;  %v1607_v16 = vadd.f32 %v1606_v57, %v1299_v44  ;;  %1323 = vadd.xlane.f32.xlu0 %v1311_v61  ;;  %v1632_v40 = vmul.f32 0.125, %v1593_v63  ;;  %v1604_v5 = vrot.slane %v1603_v37, 1 }
 0x28d   :  { %v1294_v42 = vadd.f32 %v2719_v8, %v2627_v46  ;;  %v1274_v17 = vpop.f32.mrb[23].mxu1  ;;  %v1614_v19 = vrot.slane %v1613_v35, 2  ;;  %v1631_v56 = vmul.f32 0.125, %v1587_v14  ;;  %v1598_v21 = vrot.slane %v1597_v15, 1 }
 0x28e   :  { %v1293_v20 = vadd.f32 %v2627_v46, %v1274_v17  ;;  %v1608_v22 = vrot.slane %v1607_v16, 2  ;;  %v1605_v30 = vadd.f32 %v1604_v5, %v1603_v37  ;;  %1325 = vadd.xlane.f32.xlu1 %v1312_v9 }
 0x28f   :  { %v1302_v26 = vmax.f32 %v1294_v42, 0.0  ;;  %v1615_v31 = vadd.f32 %v1614_v19, %v1613_v35  ;;  %v1667_v33 = vsel %vm349_vm0, %v1632_v40, %v1631_v56  ;;  %v1599_v36 = vadd.f32 %v1598_v21, %v1597_v15 }
 0x290   :  { %v1301_v32 = vmax.f32 %v1293_v20, 0.0  ;;  %v1609_v59 = vadd.f32 %v1608_v22, %v1607_v16  ;;  %v1634_v54 = vmul.f32 0.125, %v1605_v30  ;;  %v1340_v30 = vand.u32 127, %v238_v18 }
 0x291   :  { %v1624_v39 = vrot.slane %v1302_v26, 4  ;;  %v1616_v41 = vrot.slane %v1615_v31, 1  ;;  %v1314_v27 = vmul.f32 %v3751_v0, %v1302_v26  ;;  %v1633_v12 = vmul.f32 0.125, %v1599_v36 }
 0x292   :  { %v1618_v44 = vrot.slane %v1301_v32, 4  ;;  %v1610_v47 = vrot.slane %v1609_v59, 1  ;;  %v1313_v50 = vmul.f32 %v3751_v0, %v1301_v32 }
 0x293   :  { %v1625_v46 = vadd.f32 %v1624_v39, %v1302_v26  ;;  %v1617_v55 = vadd.f32 %v1616_v41, %v1615_v31  ;;  %1329 = vadd.xlane.f32.xlu1 %v1314_v27  ;;  %v1668_v61 = vsel %vm352_vm1, %v1633_v12, %v1667_v33  ;;  %v3768_v26 = vpop.f32.mrb[19].mxu0 }
 0x294   :  { %v1619_v57 = vadd.f32 %v1618_v44, %v1301_v32  ;;  %v1611_v63 = vadd.f32 %v1610_v47, %v1609_v59  ;;  %1327 = vadd.xlane.f32.xlu0 %v1313_v50  ;;  %v1669_v8 = vsel %vm355_vm2, %v1634_v54, %v1668_v61  ;;  %v3772_v32 = vsub.s32 %v1340_v30, %v3522_v25 }
 0x295   :  { %v1626_v37 = vrot.slane %v1625_v46, 2  ;;  %v1636_v15 = vmul.f32 0.125, %v1617_v55 }
 0x296   :  { %v1620_v35 = vrot.slane %v1619_v57, 2  ;;  %v1635_v9 = vmul.f32 0.125, %v1611_v63 }
 0x297   :  { %v1627_v14 = vadd.f32 %v1626_v37, %v1625_v46 }
 0x298   :  { %v1621_v16 = vadd.f32 %v1620_v35, %v1619_v57  ;;  %v1670_v17 = vsel %vm358_vm3, %v1635_v9, %v1669_v8 }
 0x299   :  { %v1628_v42 = vrot.slane %v1627_v14, 1  ;;  %v1671_v40 = vsel %vm361_vm4, %v1636_v15, %v1670_v17  ;;  %v1392_v17 = vsub.s32 1, %v3522_v25 }
 0x29a   :  { %v1622_v0 = vrot.slane %v1621_v16, 1 }
 0x29b   :  { %v1629_v5 = vadd.f32 %v1628_v42, %v1627_v14 }
 0x29c   :  { %v1623_v19 = vadd.f32 %v1622_v0, %v1621_v16  ;;  %v1396_v0 = vsub.s32 2, %v3522_v25 }
 0x29d   :  { %v1638_v56 = vmul.f32 0.125, %v1629_v5 }
 0x29e   :  { %v1637_v20 = vmul.f32 0.125, %v1623_v19 }
 0x2a0   :  { %v1672_v21 = vsel %vm364_vm5, %v1637_v20, %v1671_v40  ;;  %v1400_v40 = vsub.s32 3, %v3522_v25 }
 0x2a1   :  { %v1673_v22 = vsel %vm367_vm6, %v1638_v56, %v1672_v21  ;;  %v1404_v21 = vsub.s32 4, %v3522_v25 }
 0x2a2   :  { %2753 = vmatmul.mubr.f32.vlgmr.msra.gmra.mrb[20].mxu0 %v1673_v22 }
 0x30f   :  { %v1318_v31 = vpop.xlane.xlu0 %1317 }
 0x310   :  { %v1348_v39 = vrot.slane %v1318_v31, %v3772_v32 }
 0x313   :  { %v1316_v33 = vpop.xlane.xlu0 %1315  ;;  %v1322_v36 = vpop.xlane.xlu1 %1321 }
 0x314   :  { %v1344_v59 = vrot.slane %v1316_v33, %v3772_v32  ;;  %v1356_v47 = vrot.slane %v1322_v36, %v3772_v32 }
 0x316   :  { %v1373_v12 = vsel %vm349_vm0, %v1348_v39, %v1344_v59 }
 0x317   :  { %v1320_v41 = vpop.xlane.xlu1 %1319 }
 0x318   :  { %v1352_v44 = vrot.slane %v1320_v41, %v3772_v32 }
 0x319   :  { %v1324_v27 = vpop.xlane.xlu0 %1323 }
 0x31a   :  { %v1374_v18 = vsel %vm352_vm1, %v1352_v44, %v1373_v12  ;;  %v1360_v46 = vrot.slane %v1324_v27, %v3772_v32 }
 0x31b   :  { %v1326_v50 = vpop.xlane.xlu1 %1325  ;;  %v1375_v54 = vsel %vm355_vm2, %v1356_v47, %v1374_v18  ;;  %v1408_v47 = vsub.s32 5, %v3522_v25 }
 0x31c   :  { %v1364_v55 = vrot.slane %v1326_v50, %v3772_v32  ;;  %v1376_v57 = vsel %vm358_vm3, %v1360_v46, %v1375_v54 }
 0x31e   :  { %v1377_v8 = vsel %vm361_vm4, %v1364_v55, %v1376_v57  ;;  %v1412_v55 = vsub.s32 6, %v3522_v25 }
 0x320   :  { %v1330_v61 = vpop.xlane.xlu1 %1329 }
 0x321   :  { %v1328_v63 = vpop.xlane.xlu0 %1327  ;;  %v1372_v35 = vrot.slane %v1330_v61, %v3772_v32 }
 0x322   :  { %v1368_v37 = vrot.slane %v1328_v63, %v3772_v32 }
 0x324   :  { %v1378_v9 = vsel %vm364_vm5, %v1368_v37, %v1377_v8 }
 0x325   :  { %v1379_v14 = vsel %vm367_vm6, %v1372_v35, %v1378_v9 }
 0x326   :  { %v1382_v15 = vsel %vm1381_vm8, %v1379_v14, -inf }
 0x327   :  { %1383 = vmax.xlane.f32.xlu0 %v1382_v15 }
 0x375   :  { %v3790_v16 = vpop.f32.mrb[20].mxu0 }
 0x376   :  { %v2754_v42 = vpop.f32.mrb[21].mxu0 }
 0x3b4   :  { %v1384_v5 = vpop.xlane.xlu0 %1383 }
 0x3b5   :  { %v1389_v19 = vrot.slane %v1384_v5, %v3628_v51  ;;  %v1393_v20 = vrot.slane %v1384_v5, %v1392_v17  ;;  %v1397_v56 = vrot.slane %v1384_v5, %v1396_v0  ;;  %v1401_v22 = vrot.slane %v1384_v5, %v1400_v40 }
 0x3b6   :  { %v1405_v18 = vrot.slane %v1384_v5, %v1404_v21  ;;  %v1409_v57 = vrot.slane %v1384_v5, %v1408_v47 }
 0x3b7   :  { %v1426_v30 = vsub.f32 %v1316_v33, %v1389_v19  ;;  %v1427_v59 = vsub.f32 %v1318_v31, %v1393_v20  ;;  %v1428_v39 = vsub.f32 %v1320_v41, %v1397_v56  ;;  %v1429_v46 = vsub.f32 %v1322_v36, %v1401_v22 }
 0x3b8   :  { %v1430_v37 = vsub.f32 %v1324_v27, %v1405_v18  ;;  %v1416_v33 = vsub.s32 7, %v3522_v25  ;;  %v1413_v41 = vrot.slane %v1384_v5, %v1412_v55  ;;  %v1431_v35 = vsub.f32 %v1326_v50, %v1409_v57  ;;  %v1887_v25 = vld [vmem:[#allocation11] sm:$0xff] }
 0x3b9   :  { %v1434_v44 = vmul.f32 1.442695, %v1426_v30  ;;  %v1436_v12 = vmul.f32 1.442695, %v1427_v59  ;;  %v1438_v54 = vmul.f32 1.442695, %v1428_v39 }
 0x3ba   :  { %v1440_v31 = vmul.f32 1.442695, %v1429_v46  ;;  %v1442_v8 = vmul.f32 1.442695, %v1430_v37  ;;  %v1417_v14 = vrot.slane %v1384_v5, %v1416_v33  ;;  %v1432_v15 = vsub.f32 %v1328_v63, %v1413_v41 }
 0x3bb   :  { %2974 = vpow2.f32 %v1434_v44  ;;  %v1444_v27 = vmul.f32 1.442695, %v1431_v35 }
 0x3bc   :  { %2976 = vpow2.f32 %v1436_v12  ;;  %v1433_v19 = vsub.f32 %v1330_v61, %v1417_v14  ;;  %v1446_v20 = vmul.f32 1.442695, %v1432_v15 }
 0x3bd   :  { %2978 = vpow2.f32 %v1438_v54 }
 0x3be   :  { %2980 = vpow2.f32 %v1440_v31  ;;  %v1448_v56 = vmul.f32 1.442695, %v1433_v19 }
 0x3bf   :  { %2982 = vpow2.f32 %v1442_v8 }
 0x3c0   :  { %2984 = vpow2.f32 %v1444_v27 }
 0x3c1   :  { %2986 = vpow2.f32 %v1446_v20 }
 0x3c2   :  { %2988 = vpow2.f32 %v1448_v56 }
 0x3c5   :  { %v3812_v36 = vpop.eup %2974 }
 0x3c6   :  { %v2977_v9 = vpop.eup %2976  ;;  %1459 = vperm.xlu1 %2866, %v3812_v36  }
 0x3c7   :  { %1462 = vperm.xlu0 %2867, %v2977_v9   ;;  %v2979_v42 = vpop.eup %2978 }
 0x3c8   :  { %v3817_v50 = vpop.eup %2980 }
 0x3c9   :  { %v3820_v22 = vpop.eup %2982 }
 0x3ca   :  { %1465 = vperm.xlu1 %2866, %v2979_v42   ;;  %v3823_v63 = vpop.eup %2984 }
 0x3cb   :  { %v3826_v5 = vpop.eup %2986 }
 0x3cc   :  { %v3829_v61 = vpop.eup %2988 }
 0x3ce   :  { %1468 = vperm.xlu1 %2866, %v3817_v50  }
 0x3d2   :  { %1471 = vperm.xlu1 %2866, %v3820_v22  }
 0x3d6   :  { %1474 = vperm.xlu1 %2866, %v3823_v63  }
 0x3da   :  { %1477 = vperm.xlu1 %2866, %v3826_v5  }
 0x3de   :  { %1480 = vperm.xlu1 %2866, %v3829_v61  }
 0x445   :  { %v1460_v30 = vpop.permute.xlu1 %1459 }
 0x446   :  { %v1463_v12 = vpop.permute.xlu0 %1462  ;;  %v1485_v54 = vrot.slane %v1460_v30, %v3772_v32 }
 0x447   :  { %v1489_v46 = vrot.slane %v1463_v12, %v3772_v32 }
 0x449   :  { %v1466_v59 = vpop.permute.xlu1 %1465  ;;  %v1514_v35 = vsel %vm349_vm0, %v1489_v46, %v1485_v54 }
 0x44a   :  { %v1493_v57 = vrot.slane %v1466_v59, %v3772_v32 }
 0x44c   :  { %v1515_v14 = vsel %vm352_vm1, %v1493_v57, %v1514_v35 }
 0x44d   :  { %v1469_v39 = vpop.permute.xlu1 %1468 }
 0x44e   :  { %v1497_v37 = vrot.slane %v1469_v39, %v3772_v32 }
 0x450   :  { %v1516_v27 = vsel %vm355_vm2, %v1497_v37, %v1515_v14 }
 0x451   :  { %v1472_v44 = vpop.permute.xlu1 %1471 }
 0x452   :  { %v1501_v31 = vrot.slane %v1472_v44, %v3772_v32 }
 0x454   :  { %v1517_v19 = vsel %vm358_vm3, %v1501_v31, %v1516_v27 }
 0x455   :  { %v1475_v18 = vpop.permute.xlu1 %1474 }
 0x456   :  { %v1505_v8 = vrot.slane %v1475_v18, %v3772_v32 }
 0x458   :  { %v1518_v56 = vsel %vm361_vm4, %v1505_v8, %v1517_v19  ;;  %v1890_v19 = vld [vmem:[#allocation11 + $0x18] sm:$0xff] }
 0x459   :  { %v1478_v41 = vpop.permute.xlu1 %1477 }
 0x45a   :  { %v1509_v15 = vrot.slane %v1478_v41, %v3772_v32 }
 0x45c   :  { %v1519_v59 = vsel %vm364_vm5, %v1509_v15, %v1518_v56 }
 0x45d   :  { %v1481_v20 = vpop.permute.xlu1 %1480 }
 0x45e   :  { %v1513_v30 = vrot.slane %v1481_v20, %v3772_v32 }
 0x460   :  { %v1520_v39 = vsel %vm367_vm6, %v1513_v30, %v1519_v59  ;;  %v1892_v59 = vld [vmem:[#allocation11 + $0x28] sm:$0xff] }
 0x461   :  { %v1522_v44 = vsel %vm1381_vm8, %v1520_v39, 0.0 }
 0x462   :  { %1523 = vadd.xlane.f32.xlu1 %v1522_v44 }
 0x4ef   :  { %v1524_v12 = vpop.xlane.xlu1 %1523 }
 0x4f0   :  { %v1533_v18 = vrot.slane %v1524_v12, %v1392_v17  ;;  %v1537_v46 = vrot.slane %v1524_v12, %v1396_v0  ;;  %v1529_v54 = vrot.slane %v1524_v12, %v3628_v51  ;;  %v1541_v32 = vrot.slane %v1524_v12, %v1400_v40 }
 0x4f1   :  { %v1545_v37 = vrot.slane %v1524_v12, %v1404_v21  ;;  %v1549_v17 = vrot.slane %v1524_v12, %v1408_v47  ;;  %v1553_v8 = vrot.slane %v1524_v12, %v1412_v55  ;;  %v1557_v21 = vrot.slane %v1524_v12, %v1416_v33  ;;  %v1889_v33 = vld [vmem:[#allocation11 + $0x10] sm:$0xff] }
 0x4f2   :  { %2990 = vrcp.f32 %v1533_v18  ;;  %v1893_v12 = vld [vmem:[#allocation11 + $0x30] sm:$0xff] }
 0x4f3   :  { %2992 = vrcp.f32 %v1537_v46  ;;  %v1898_v46 = vld [vmem:[#allocation11 + $0x58] sm:$0xff] }
 0x4f4   :  { %2994 = vrcp.f32 %v1529_v54 }
 0x4f5   :  { %2996 = vrcp.f32 %v1541_v32  ;;  %v1895_v32 = vld [vmem:[#allocation11 + $0x40] sm:$0xff] }
 0x4f6   :  { %2998 = vrcp.f32 %v1545_v37 }
 0x4f7   :  { %3000 = vrcp.f32 %v1549_v17 }
 0x4f8   :  { %3002 = vrcp.f32 %v1553_v8  ;;  %v1904_v8 = vld [vmem:[#allocation11 + $0x88] sm:$0xff] }
 0x4f9   :  { %3004 = vrcp.f32 %v1557_v21  ;;  %v1903_v21 = vld [vmem:[#allocation11 + $0x80] sm:$0xff] }
 0x4fc   :  { %v2991_v57 = vpop.eup %2990 }
 0x4fd   :  { %v1569_v31 = vmul.f32 %v2991_v57, %v2977_v9  ;;  %v2993_v41 = vpop.eup %2992  ;;  %v1897_v57 = vld [vmem:[#allocation11 + $0x50] sm:$0xff] }
 0x4fe   :  { %v1571_v0 = vmul.f32 %v2993_v41, %v2979_v42  ;;  %v2995_v35 = vpop.eup %2994  ;;  %v2821_v37 = vpack.c.bf16 %v1897_v57, %v1895_v32  ;;  %v1902_v41 = vld [vmem:[#allocation11 + $0x78] sm:$0xff] }
 0x4ff   :  { %1758 = vperm.xlu0 %2867, %v1569_v31   ;;  %v1567_v40 = vmul.f32 %v2995_v35, %v3812_v36  ;;  %v2997_v14 = vpop.eup %2996  ;;  %v1888_v36 = vld [vmem:[#allocation11 + $0x8] sm:$0xff] }
 0x500   :  { %v1573_v9 = vmul.f32 %v2997_v14, %v3817_v50  ;;  %v2999_v15 = vpop.eup %2998  ;;  %v2811_v56 = vpack.c.bf16 %v1890_v19, %v1888_v36  ;;  %v2813_v50 = vpack.c.bf16 %v1889_v33, %v1887_v25  ;;  %v1900_v31 = vld [vmem:[#allocation11 + $0x68] sm:$0xff]  ;;  %v1909_v36 = vld [vmem:[#allocation11 + $0xb0] sm:$0xff]  ;;  %v1911_v33 = vld [vmem:[#allocation11 + $0xc0] sm:$0xff] }
 0x501   :  { %v1575_v47 = vmul.f32 %v2999_v15, %v3820_v22  ;;  %v3001_v42 = vpop.eup %3000  ;;  %v1894_v22 = vld [vmem:[#allocation11 + $0x38] sm:$0xff]  ;;  %v2823_v17 = vpack.c.bf16 %v1902_v41, %v1900_v31 }
 0x502   :  { %v1577_v27 = vmul.f32 %v3001_v42, %v3823_v63  ;;  %v3003_v55 = vpop.eup %3002  ;;  %2812 = vmatprep.subr.bf16.mxu1 %v2811_v56  ;;  %v2815_v44 = vpack.c.bf16 %v1894_v22, %v1892_v59  ;;  %v1891_v63 = vld [vmem:[#allocation11 + $0x20] sm:$0xff]  ;;  %v1910_v42 = vld [vmem:[#allocation11 + $0xb8] sm:$0xff] }
 0x503   :  { %1763 = vperm.xlu0 %2867, %v1571_v0   ;;  %v1579_v20 = vmul.f32 %v3003_v55, %v3826_v5  ;;  %v3005_v30 = vpop.eup %3004  ;;  %2814 = vmatpush1.bf16.msra.mxu1 %v2813_v50  ;;  %v2817_v18 = vpack.c.bf16 %v1893_v12, %v1891_v63  ;;  %v1896_v5 = vld [vmem:[#allocation11 + $0x48] sm:$0xff]  ;;  %v1899_v0 = vld [vmem:[#allocation11 + $0x60] sm:$0xff]  ;;  %v1914_v56 = vld [vmem:[#allocation11 + $0xd8] sm:$0xff] }
 0x504   :  { %v1581_v39 = vmul.f32 %v3005_v30, %v3829_v61  ;;  %2816 = vmatprep.subr.bf16.mxu1 %v2815_v44  ;;  %v2819_v54 = vpack.c.bf16 %v1898_v46, %v1896_v5  ;;  %v1901_v61 = vld [vmem:[#allocation11 + $0x70] sm:$0xff]  ;;  %v1907_v55 = vld [vmem:[#allocation11 + $0xa0] sm:$0xff]  ;;  %v1916_v50 = vld [vmem:[#allocation11 + $0xe8] sm:$0xff] }
 0x505   :  { %v2825_v35 = vpack.c.bf16 %v1901_v61, %v1899_v0  ;;  %v2833_v19 = vpack.c.bf16 %v1909_v36, %v1907_v55  ;;  %v1913_v30 = vld [vmem:[#allocation11 + $0xd0] sm:$0xff]  ;;  %v1918_v22 = vld [vmem:[#allocation11 + $0xf8] sm:$0xff] }
 0x506   :  { %v2837_v59 = vpack.c.bf16 %v1913_v30, %v1911_v33  ;;  %v1917_v44 = vld [vmem:[#allocation11 + $0xf0] sm:$0xff]  ;;  %v2839_v63 = vpack.c.bf16 %v1918_v22, %v1916_v50 }
 0x507   :  { %1753 = vperm.xlu0 %2867, %v1567_v40   ;;  %2818 = vmatpush1.bf16.msra.mxu1 %v2817_v18  ;;  %v1906_v40 = vld [vmem:[#allocation11 + $0x98] sm:$0xff]  ;;  %v2629_v18 = vld [vmem:[%s4236_s10 + $0x4] ss:$0 sm:$0xff] }
 0x508   :  { %2820 = vmatprep.subr.bf16.mxu1 %v2819_v54  ;;  %v2827_v14 = vpack.c.bf16 %v1906_v40, %v1904_v8  ;;  %v1742_v5 = vadd.f32 %v2629_v18, %v3790_v16 }
 0x50a   :  { %v2630_v46 = vmul.f32 -1.442695, %v1742_v5 }
 0x50b   :  { %1768 = vperm.xlu0 %2867, %v1573_v9   ;;  %2822 = vmatpush1.bf16.msra.mxu1 %v2821_v37  ;;  %v1905_v9 = vld [vmem:[#allocation11 + $0x90] sm:$0xff] }
 0x50c   :  { %2824 = vmatprep.subr.bf16.mxu1 %v2823_v17  ;;  %v2829_v15 = vpack.c.bf16 %v1905_v9, %v1903_v21  ;;  %3006 = vpow2.f32 %v2630_v46 }
 0x50f   :  { %1773 = vperm.xlu0 %2867, %v1575_v47   ;;  %2826 = vmatpush1.bf16.msra.mxu1 %v2825_v35  ;;  %v1908_v47 = vld [vmem:[#allocation11 + $0xa8] sm:$0xff] }
 0x510   :  { %2828 = vmatprep.subr.bf16.mxu1 %v2827_v14 }
 0x513   :  { %1778 = vperm.xlu0 %2867, %v1577_v27   ;;  %2830 = vmatpush1.bf16.msra.mxu1 %v2829_v15  ;;  %v2831_v27 = vpack.c.bf16 %v1910_v42, %v1908_v47 }
 0x515   :  { %2832 = vmatprep.subr.bf16.mxu1 %v2831_v27 }
 0x516   :  { %v3007_v54 = vpop.eup %3006 }
 0x517   :  { %1783 = vperm.xlu0 %2867, %v1579_v20   ;;  %2834 = vmatpush1.bf16.msra.mxu1 %v2833_v19  ;;  %v1912_v20 = vld [vmem:[#allocation11 + $0xc8] sm:$0xff]  ;;  %v1748_v32 = vadd.f32 1.0, %v3007_v54 }
 0x518   :  { %v2835_v25 = vpack.c.bf16 %v1914_v56, %v1912_v20 }
 0x519   :  { %3008 = vrcp.f32 %v1748_v32 }
 0x51a   :  { %2836 = vmatprep.subr.bf16.mxu1 %v2835_v25 }
 0x51b   :  { %1788 = vperm.xlu0 %2867, %v1581_v39   ;;  %v1915_v39 = vld [vmem:[#allocation11 + $0xe0] sm:$0xff]  ;;  %2838 = vmatpush1.bf16.msra.mxu1 %v2837_v59 }
 0x51c   :  { %v2841_v12 = vpack.c.bf16 %v1917_v44, %v1915_v39  ;;  %2840 = vmatprep.subr.bf16.mxu1 %v2839_v63 }
 0x51f   :  { %2842 = vmatpush1.bf16.msra.mxu1 %v2841_v12 }
 0x523   :  { %v3876_v21 = vpop.eup %3008 }
 0x524   :  { %v1857_v39 = vrot.slane %v3876_v21, 2 }
 0x57e   :  { %v1759_v57 = vpop.permute.xlu0 %1758 }
 0x57f   :  { %v1792_v37 = vmul.f32 %v1759_v57, %v3698_v4 }
 0x581   :  { %v1805_v31 = vrot.slane %v1792_v37, 4 }
 0x582   :  { %v1764_v41 = vpop.permute.xlu0 %1763 }
 0x583   :  { %v1806_v17 = vadd.f32 %v1805_v31, %v1792_v37  ;;  %v1793_v0 = vmul.f32 %v1764_v41, %v3716_v34  ;;  %v1856_v34 = vrot.slane %v3876_v21, 1 }
 0x585   :  { %v1807_v61 = vrot.slane %v1806_v17, 2  ;;  %v1811_v35 = vrot.slane %v1793_v0, 4 }
 0x586   :  { %v1754_v8 = vpop.permute.xlu0 %1753 }
 0x587   :  { %v1808_v40 = vadd.f32 %v1807_v61, %v1806_v17  ;;  %v1812_v14 = vadd.f32 %v1811_v35, %v1793_v0  ;;  %v1791_v16 = vmul.f32 %v1754_v8, %v3696_v1 }
 0x589   :  { %v1809_v9 = vrot.slane %v1808_v40, 1  ;;  %v1813_v15 = vrot.slane %v1812_v14, 2  ;;  %v1799_v47 = vrot.slane %v1791_v16, 4 }
 0x58a   :  { %v1769_v42 = vpop.permute.xlu0 %1768 }
 0x58b   :  { %v1810_v27 = vadd.f32 %v1809_v9, %v1808_v40  ;;  %v1814_v4 = vadd.f32 %v1813_v15, %v1812_v14  ;;  %v1800_v55 = vadd.f32 %v1799_v47, %v1791_v16  ;;  %v1794_v36 = vmul.f32 %v1769_v42, %v3719_v24 }
 0x58c   :  { %v1858_v16 = vrot.slane %v3876_v21, 3 }
 0x58d   :  { %v1848_v19 = vmul.f32 0.125, %v1810_v27  ;;  %v1815_v20 = vrot.slane %v1814_v4, 1  ;;  %v1801_v56 = vrot.slane %v1800_v55, 2  ;;  %v1817_v25 = vrot.slane %v1794_v36, 4 }
 0x58e   :  { %v1774_v33 = vpop.permute.xlu0 %1773 }
 0x58f   :  { %v1872_v30 = vmul.f32 %v1856_v34, %v1848_v19  ;;  %v1816_v1 = vadd.f32 %v1815_v20, %v1814_v4  ;;  %v1802_v50 = vadd.f32 %v1801_v56, %v1800_v55  ;;  %v1818_v59 = vadd.f32 %v1817_v25, %v1794_v36 }
 0x590   :  { %v1795_v22 = vmul.f32 %v1774_v33, %v3730_v49 }
 0x591   :  { %1880 = vst [vmem:[#allocation16 + $0x1] sm:$0x1] %v1872_v30  ;;  %v1849_v44 = vmul.f32 0.125, %v1816_v1  ;;  %v1803_v63 = vrot.slane %v1802_v50, 1  ;;  %v1819_v12 = vrot.slane %v1818_v59, 2  ;;  %v1927_v17 = vrot.slane %v1872_v30, 7 }
 0x592   :  { %v1823_v24 = vrot.slane %v1795_v22, 4  ;;  %v1779_v18 = vpop.permute.xlu0 %1778  ;;  %v1859_v1 = vrot.slane %v3876_v21, 4 }
 0x593   :  { %v1873_v5 = vmul.f32 %v1857_v39, %v1849_v44  ;;  %v1804_v46 = vadd.f32 %v1803_v63, %v1802_v50  ;;  %v1820_v54 = vadd.f32 %v1819_v12, %v1818_v59  ;;  %v1796_v32 = vmul.f32 %v1779_v18, %v3733_v53 }
 0x594   :  { %v1824_v57 = vadd.f32 %v1823_v24, %v1795_v22  ;;  %v1860_v12 = vrot.slane %v3876_v21, 5 }
 0x595   :  { %1881 = vst [vmem:[#allocation16 + $0x2] sm:$0x1] %v1873_v5  ;;  %v1847_v37 = vmul.f32 0.125, %v1804_v46  ;;  %v1821_v31 = vrot.slane %v1820_v54, 1  ;;  %v1829_v41 = vrot.slane %v1796_v32, 4  ;;  %v1929_v14 = vrot.slane %v1873_v5, 6 }
 0x596   :  { %v1825_v49 = vrot.slane %v1824_v57, 2  ;;  %v1784_v0 = vpop.permute.xlu0 %1783 }
 0x597   :  { %v1871_v61 = vmul.f32 %v3876_v21, %v1847_v37  ;;  %v1822_v35 = vadd.f32 %v1821_v31, %v1820_v54  ;;  %v1830_v8 = vadd.f32 %v1829_v41, %v1796_v32  ;;  %v1797_v40 = vmul.f32 %v1784_v0, %v3740_v3 }
 0x598   :  { %v1826_v9 = vadd.f32 %v1825_v49, %v1824_v57  ;;  %v1861_v31 = vrot.slane %v3876_v21, 6 }
 0x599   :  { %1879 = vst [vmem:[#allocation16] sm:$0x1] %v1871_v61  ;;  %v1928_v53 = vsel %vm349_vm0, %v1927_v17, %v1871_v61  ;;  %v1850_v15 = vmul.f32 0.125, %v1822_v35  ;;  %v1831_v47 = vrot.slane %v1830_v8, 2  ;;  %v1835_v42 = vrot.slane %v1797_v40, 4 }
 0x59a   :  { %v1930_v27 = vsel %vm352_vm1, %v1929_v14, %v1928_v53  ;;  %v1827_v4 = vrot.slane %v1826_v9, 1  ;;  %v1789_v55 = vpop.permute.xlu0 %1788 }
 0x59b   :  { %v1874_v36 = vmul.f32 %v1858_v16, %v1850_v15  ;;  %v1832_v34 = vadd.f32 %v1831_v47, %v1830_v8  ;;  %v1836_v19 = vadd.f32 %v1835_v42, %v1797_v40  ;;  %v1798_v20 = vmul.f32 %v1789_v55, %v3743_v7 }
 0x59c   :  { %v1828_v3 = vadd.f32 %v1827_v4, %v1826_v9  ;;  %v1862_v8 = vrot.slane %v3876_v21, 7 }
 0x59d   :  { %1882 = vst [vmem:[#allocation16 + $0x3] sm:$0x1] %v1874_v36  ;;  %v1931_v56 = vrot.slane %v1874_v36, 5  ;;  %v1833_v25 = vrot.slane %v1832_v34, 1  ;;  %v1837_v33 = vrot.slane %v1836_v19, 2  ;;  %v1841_v30 = vrot.slane %v1798_v20, 4 }
 0x59e   :  { %v1851_v50 = vmul.f32 0.125, %v1828_v3 }
 0x59f   :  { %v1834_v59 = vadd.f32 %v1833_v25, %v1832_v34  ;;  %v1838_v22 = vadd.f32 %v1837_v33, %v1836_v19  ;;  %v1842_v39 = vadd.f32 %v1841_v30, %v1798_v20  ;;  %v1932_v44 = vsel %vm355_vm2, %v1931_v56, %v1930_v27 }
 0x5a0   :  { %v1875_v63 = vmul.f32 %v1859_v1, %v1851_v50  ;;  %v3042_v50 = vld [vmem:[#allocation2] sm:$0xff]  }
 0x5a1   :  { %v1852_v24 = vmul.f32 0.125, %v1834_v59  ;;  %v1839_v18 = vrot.slane %v1838_v22, 1  ;;  %v1843_v7 = vrot.slane %v1842_v39, 2  ;;  %v172_v59 = vunpack.c.l.bf16 %v3042_v50 }
 0x5a2   :  { %1883 = vst [vmem:[#allocation16 + $0x4] sm:$0x1] %v1875_v63  ;;  %v1933_v5 = vrot.slane %v1875_v63, 4  ;;  %v3914_v63 = vld [vmem:[#allocation5] sm:$0xff]  }
 0x5a3   :  { %v1876_v46 = vmul.f32 %v1860_v12, %v1852_v24  ;;  %v1840_v54 = vadd.f32 %v1839_v18, %v1838_v22  ;;  %v1844_v32 = vadd.f32 %v1843_v7, %v1842_v39  ;;  %v188_v12 = vunpack.c.l.bf16 %v3914_v63 }
 0x5a4   :  { %v1934_v57 = vsel %vm358_vm3, %v1933_v5, %v1932_v44  ;;  %v173_v44 = vunpack.c.h.bf16 %v3042_v50  ;;  %v3920_v5 = vld [vmem:[#allocation2 + $0x8] sm:$0xff]  }
 0x5a5   :  { %1884 = vst [vmem:[#allocation16 + $0x5] sm:$0x1] %v1876_v46  ;;  %v1935_v37 = vrot.slane %v1876_v46, 3  ;;  %v1853_v41 = vmul.f32 0.125, %v1840_v54  ;;  %v1845_v17 = vrot.slane %v1844_v32, 1  ;;  %v174_v46 = vunpack.c.l.bf16 %v3920_v5 }
 0x5a7   :  { %v1877_v49 = vmul.f32 %v1861_v31, %v1853_v41  ;;  %v1846_v0 = vadd.f32 %v1845_v17, %v1844_v32  ;;  %v1936_v61 = vsel %vm361_vm4, %v1935_v37, %v1934_v57  ;;  %v3924_v37 = vld [vmem:[#allocation5 + $0x8] sm:$0xff]  }
 0x5a8   :  { %v190_v31 = vunpack.c.l.bf16 %v3924_v37 }
 0x5a9   :  { %1885 = vst [vmem:[#allocation16 + $0x6] sm:$0x1] %v1877_v49  ;;  %v1937_v35 = vrot.slane %v1877_v49, 2  ;;  %v1854_v40 = vmul.f32 0.125, %v1846_v0 }
 0x5ab   :  { %v1878_v14 = vmul.f32 %v1862_v8, %v1854_v40  ;;  %v1938_v16 = vsel %vm364_vm5, %v1937_v35, %v1936_v61  ;;  %v3934_v61 = vld [vmem:[%s4236_s10 + $0x5] ss:$0 sm:$0xff]  ;;  %v3939_v35 = vld [vmem:[%s4236_s10 + $0x6] ss:$0 sm:$0xff] }
 0x5ad   :  { %1886 = vst [vmem:[#allocation16 + $0x7] sm:$0x1] %v1878_v14  ;;  %v1939_v9 = vrot.slane %v1878_v14, 1 }
 0x5af   :  { %v1940_v53 = vsel %vm367_vm6, %v1939_v9, %v1938_v16 }
 0x5b0   :  { %2007 = vmatmul.mubr.f32.vlgmr.msra.gmra.mrb[24].mxu1 %v1940_v53 }
 0x683   :  { %v2008_v15 = vpop.f32.mrb[24].mxu1 }
 0x684   :  { %v2014_v47 = vcombine.high %v2008_v15, %v2008_v15  ;;  %v2021_v42 = vrot.slane %v2008_v15, %v3525_v29  ;;  %v2010_v27 = vpop.f32.mrb[25].mxu1 }
 0x685   :  { %v2064_v4 = vcombine.high %v2010_v27, %v2010_v27  ;;  %v2071_v55 = vrot.slane %v2010_v27, %v3525_v29 }
 0x686   :  { %v2028_v36 = vrot.slane %v2014_v47, %v3525_v29  ;;  %v2029_v21 = vcombine.high %v2021_v42, %v2021_v42  ;;  %v2037_v34 = vrot.slane %v2021_v42, %v3525_v29 }
 0x687   :  { %v2078_v19 = vrot.slane %v2064_v4, %v3525_v29  ;;  %v2087_v20 = vrot.slane %v2071_v55, %v3525_v29  ;;  %v2079_v30 = vcombine.high %v2071_v55, %v2071_v55 }
 0x688   :  { %v3905_v3 = vrot.slane %v2028_v36, %v3525_v29  ;;  %v3908_v56 = vrot.slane %v2029_v21, %v3525_v29  ;;  %v2059_v25 = vcombine.high %v2037_v34, %v2037_v34  ;;  %v2030_v33 = vcombine.high %v2028_v36, %v2028_v36 }
 0x689   :  { %v2094_v1 = vrot.slane %v2078_v19, %v3525_v29  ;;  %v2116_v22 = vrot.slane %v2037_v34, %v3628_v51  ;;  %v2109_v7 = vcombine.high %v2087_v20, %v2087_v20  ;;  %v2080_v54 = vcombine.high %v2078_v19, %v2078_v19 }
 0x68a   :  { %v2120_v39 = vrot.slane %v3908_v56, %v3628_v51  ;;  %v2124_v24 = vrot.slane %v2059_v25, %v3628_v51  ;;  %v2132_v18 = vrot.slane %v3905_v3, %v3628_v51  ;;  %v2313_v57 = vrot.slane %v2087_v20, %v3628_v51  ;;  %v3962_v20 = vld [vmem:[#allocation5 + $0x10] sm:$0xff]  }
 0x68b   :  { %v2110_v32 = vcombine.high %v2094_v1, %v2094_v1  ;;  %v2058_v41 = vrot.slane %v2030_v33, %v3525_v29  ;;  %v2101_v17 = vrot.slane %v2079_v30, %v3525_v29  ;;  %v2321_v49 = vrot.slane %v2109_v7, %v3628_v51 }
 0x68c   :  { %v2329_v0 = vrot.slane %v2094_v1, %v3628_v51  ;;  %v2153_v8 = vadd.f32 %v2116_v22, %v3584_v6  ;;  %v2154_v40 = vadd.f32 %v2120_v39, %v3590_v11  ;;  %v2350_v14 = vadd.f32 %v2313_v57, %v3682_v52 }
 0x68d   :  { %v2155_v16 = vadd.f32 %v2124_v24, %v3593_v23  ;;  %v2352_v9 = vadd.f32 %v2321_v49, %v3706_v2  ;;  %v2157_v15 = vadd.f32 %v2132_v18, %v3613_v38  ;;  %v2337_v47 = vrot.slane %v2110_v32, %v3628_v51 }
 0x68e   :  { %v2354_v53 = vadd.f32 %v2329_v0, %v3724_v45  ;;  %v2061_v42 = vcombine.high %v3908_v56, %v3908_v56  ;;  %v2165_v27 = vadd.f32 %v3934_v61, %v2153_v8  ;;  %v2166_v6 = vadd.f32 %v3934_v61, %v2154_v40  ;;  %v3047_v8 = vld [vmem:[#allocation2 + $0x10] sm:$0xff]  }
 0x68f   :  { %v2362_v11 = vadd.f32 %v3939_v35, %v2350_v14  ;;  %v2108_v52 = vrot.slane %v2080_v54, %v3525_v29  ;;  %v2364_v23 = vadd.f32 %v3939_v35, %v2352_v9  ;;  %v2167_v2 = vadd.f32 %v3934_v61, %v2155_v16 }
 0x690   :  { %v2356_v45 = vadd.f32 %v2337_v47, %v3736_v58  ;;  %v2317_v38 = vrot.slane %v2101_v17, %v3628_v51  ;;  %v2173_v4 = vmax.f32 %v2165_v27, 0.0  ;;  %v2174_v55 = vmax.f32 %v2166_v6, 0.0 }
 0x691   :  { %v2366_v36 = vadd.f32 %v3939_v35, %v2354_v53  ;;  %v2060_v21 = vcombine.high %v3905_v3, %v3905_v3  ;;  %v2111_v34 = vcombine.high %v2101_v17, %v2101_v17  ;;  %v2370_v19 = vmax.f32 %v2362_v11, 0.0 }
 0x692   :  { %v192_v29 = vunpack.c.l.bf16 %v3962_v20  ;;  %v2062_v56 = vcombine.high %v2058_v41, %v2058_v41  ;;  %v3965_v25 = vadd.f32 %v2173_v4, %v172_v59  ;;  %v3967_v33 = vadd.f32 %v2174_v55, %v173_v44 }
 0x693   :  { %v2372_v58 = vmax.f32 %v2364_v23, 0.0  ;;  %v2112_v30 = vcombine.high %v2108_v52, %v2108_v52  ;;  %v2175_v1 = vmax.f32 %v2167_v2, 0.0  ;;  %v2169_v50 = vadd.f32 %v3934_v61, %v2157_v15  ;;  %v3049_v2 = vld [vmem:[#allocation2 + $0x18] sm:$0xff]  }
 0x694   :  { %v2368_v22 = vadd.f32 %v3939_v35, %v2356_v45  ;;  %2189 = vadd.xlane.f32.xlu1 %v3965_v25  ;;  %2191 = vadd.xlane.f32.xlu0 %v3967_v33  ;;  %v2374_v3 = vmax.f32 %v2366_v36, 0.0  ;;  %v2351_v39 = vadd.f32 %v2317_v38, %v3692_v62  ;;  %v2128_v24 = vrot.slane %v2061_v42, %v3628_v51 }
 0x695   :  { %v2136_v59 = vrot.slane %v2058_v41, %v3628_v51  ;;  %v3976_v44 = vadd.f32 %v2370_v19, %v188_v12  ;;  %v2140_v18 = vrot.slane %v2060_v21, %v3628_v51  ;;  %v2325_v7 = vrot.slane %v2111_v34, %v3628_v51 }
 0x696   :  { %v2333_v54 = vrot.slane %v2108_v52, %v3628_v51  ;;  %v3981_v32 = vadd.f32 %v2372_v58, %v190_v31  ;;  %v2156_v57 = vadd.f32 %v2128_v24, %v3601_v28  ;;  %v2144_v62 = vrot.slane %v2062_v56, %v3628_v51 }
 0x697   :  { %v2158_v17 = vadd.f32 %v2136_v59, %v3619_v43  ;;  %v2159_v49 = vadd.f32 %v2140_v18, %v3642_v60  ;;  %v2353_v41 = vadd.f32 %v2325_v7, %v3713_v10  ;;  %v2341_v0 = vrot.slane %v2112_v30, %v3628_v51  ;;  %v3048_v43 = vld [vmem:[#allocation5 + $0x18] sm:$0xff]  }
 0x698   :  { %v2355_v12 = vadd.f32 %v2333_v54, %v3728_v48  ;;  %2386 = vadd.xlane.f32.xlu1 %v3976_v44  ;;  %2390 = vadd.xlane.f32.xlu0 %v3981_v32  ;;  %v2160_v31 = vadd.f32 %v2144_v62, %v3654_v13  ;;  %v176_v28 = vunpack.c.l.bf16 %v3047_v8  ;;  %v2177_v40 = vmax.f32 %v2169_v50, 0.0 }
 0x699   :  { %v194_v14 = vunpack.c.l.bf16 %v3048_v43  ;;  %v2357_v16 = vadd.f32 %v2341_v0, %v3768_v26  ;;  %v3996_v60 = vadd.f32 %v2175_v1, %v174_v46  ;;  %v3998_v10 = vadd.f32 %v2374_v3, %v192_v29 }
 0x69a   :  { %v2376_v51 = vmax.f32 %v2368_v22, 0.0  ;;  %v2363_v48 = vadd.f32 %v3939_v35, %v2351_v39  ;;  %v189_v13 = vunpack.c.h.bf16 %v3914_v63  ;;  %v4004_v9 = vadd.f32 %v2177_v40, %v176_v28 }
 0x69b   :  { %v2168_v15 = vadd.f32 %v3934_v61, %v2156_v57  ;;  %v175_v47 = vunpack.c.h.bf16 %v3920_v5  ;;  %v2170_v27 = vadd.f32 %v3934_v61, %v2158_v17  ;;  %v177_v6 = vunpack.c.h.bf16 %v3047_v8 }
 0x69c   :  { %2193 = vadd.xlane.f32.xlu1 %v3996_v60  ;;  %2394 = vadd.xlane.f32.xlu0 %v3998_v10  ;;  %v4006_v53 = vadd.f32 %v2376_v51, %v194_v14  ;;  %v2371_v26 = vmax.f32 %v2363_v48, 0.0  ;;  %v2171_v52 = vadd.f32 %v3934_v61, %v2159_v49  ;;  %v178_v45 = vunpack.c.l.bf16 %v3049_v2 }
 0x69d   :  { %v2176_v42 = vmax.f32 %v2168_v15, 0.0  ;;  %v2178_v11 = vmax.f32 %v2170_v27, 0.0  ;;  %v2365_v5 = vadd.f32 %v3939_v35, %v2353_v41  ;;  %v191_v55 = vunpack.c.h.bf16 %v3924_v37 }
 0x69e   :  { %v4011_v46 = vadd.f32 %v2371_v26, %v189_v13  ;;  %v2179_v38 = vmax.f32 %v2171_v52, 0.0  ;;  %v2367_v21 = vadd.f32 %v3939_v35, %v2355_v12  ;;  %v193_v19 = vunpack.c.h.bf16 %v3962_v20 }
 0x69f   :  { %v4016_v63 = vadd.f32 %v2176_v42, %v175_v47  ;;  %v4020_v23 = vadd.f32 %v2178_v11, %v177_v6  ;;  %v2373_v36 = vmax.f32 %v2365_v5, 0.0  ;;  %v2172_v56 = vadd.f32 %v3934_v61, %v2160_v31 }
 0x6a0   :  { %2197 = vadd.xlane.f32.xlu1 %v4004_v9  ;;  %2398 = vadd.xlane.f32.xlu0 %v4006_v53  ;;  %v4024_v4 = vadd.f32 %v2179_v38, %v178_v45  ;;  %v2375_v29 = vmax.f32 %v2367_v21, 0.0  ;;  %v179_v30 = vunpack.c.h.bf16 %v3049_v2  ;;  %v2369_v37 = vadd.f32 %v3939_v35, %v2357_v16 }
 0x6a1   :  { %v4029_v34 = vadd.f32 %v2373_v36, %v191_v55  ;;  %v2180_v1 = vmax.f32 %v2172_v56, 0.0  ;;  %v195_v22 = vunpack.c.h.bf16 %v3048_v43 }
 0x6a2   :  { %v4034_v58 = vadd.f32 %v2375_v29, %v193_v19  ;;  %v2377_v3 = vmax.f32 %v2369_v37, 0.0 }
 0x6a3   :  { %v4038_v50 = vadd.f32 %v2180_v1, %v179_v30 }
 0x6a4   :  { %2388 = vadd.xlane.f32.xlu1 %v4011_v46  ;;  %v4041_v20 = vadd.f32 %v2377_v3, %v195_v22 }
 0x6a8   :  { %2195 = vadd.xlane.f32.xlu1 %v4016_v63 }
 0x6ac   :  { %2199 = vadd.xlane.f32.xlu1 %v4020_v23 }
 0x6b0   :  { %2201 = vadd.xlane.f32.xlu1 %v4024_v4 }
 0x6b4   :  { %2392 = vadd.xlane.f32.xlu1 %v4029_v34 }
 0x6b8   :  { %2396 = vadd.xlane.f32.xlu1 %v4034_v58 }
 0x6bc   :  { %2203 = vadd.xlane.f32.xlu1 %v4038_v50 }
 0x6c0   :  { %2400 = vadd.xlane.f32.xlu1 %v4041_v20 }
 0x721   :  { %v2190_v61 = vpop.xlane.xlu1 %2189  ;;  %v2192_v39 = vpop.xlane.xlu0 %2191 }
 0x722   :  { %v2206_v24 = vmul.f32 0.0078125, %v2190_v61  ;;  %v2207_v59 = vmul.f32 0.0078125, %v2192_v39 }
 0x724   :  { %v4045_v18 = vsub.f32 %v3965_v25, %v2206_v24  ;;  %v4048_v35 = vsub.f32 %v3967_v33, %v2207_v59 }
 0x725   :  { %v2387_v7 = vpop.xlane.xlu1 %2386  ;;  %v2391_v49 = vpop.xlane.xlu0 %2390 }
 0x726   :  { %v2402_v54 = vmul.f32 0.0078125, %v2387_v7  ;;  %v2222_v57 = vmul.f32 %v4045_v18, %v4045_v18  ;;  %v2223_v17 = vmul.f32 %v4048_v35, %v4048_v35  ;;  %v2404_v31 = vmul.f32 0.0078125, %v2391_v49 }
 0x728   :  { %v4055_v62 = vsub.f32 %v3976_v44, %v2402_v54  ;;  %2230 = vadd.xlane.f32.xlu0 %v2222_v57  ;;  %2232 = vadd.xlane.f32.xlu1 %v2223_v17  ;;  %v4068_v14 = vsub.f32 %v3981_v32, %v2404_v31 }
 0x729   :  { %v2194_v41 = vpop.xlane.xlu1 %2193  ;;  %v2395_v44 = vpop.xlane.xlu0 %2394 }
 0x72a   :  { %v2208_v25 = vmul.f32 0.0078125, %v2194_v41  ;;  %v2418_v33 = vmul.f32 %v4055_v62, %v4055_v62  ;;  %v2406_v16 = vmul.f32 0.0078125, %v2395_v44  ;;  %v2420_v15 = vmul.f32 %v4068_v14, %v4068_v14 }
 0x72c   :  { %v4060_v12 = vsub.f32 %v3996_v60, %v2208_v25  ;;  %2426 = vadd.xlane.f32.xlu0 %v2418_v33  ;;  %v4076_v26 = vsub.f32 %v3998_v10, %v2406_v16 }
 0x72d   :  { %v2198_v0 = vpop.xlane.xlu1 %2197  ;;  %v2399_v6 = vpop.xlane.xlu0 %2398 }
 0x72e   :  { %v2210_v8 = vmul.f32 0.0078125, %v2198_v0  ;;  %v2224_v28 = vmul.f32 %v4060_v12, %v4060_v12  ;;  %v2422_v27 = vmul.f32 %v4076_v26, %v4076_v26  ;;  %v2408_v2 = vmul.f32 0.0078125, %v2399_v6 }
 0x730   :  { %v4065_v40 = vsub.f32 %v4004_v9, %v2210_v8  ;;  %2234 = vadd.xlane.f32.xlu0 %v2224_v28  ;;  %v4098_v55 = vsub.f32 %v4006_v53, %v2408_v2 }
 0x731   :  { %v2389_v43 = vpop.xlane.xlu1 %2388 }
 0x732   :  { %v2403_v51 = vmul.f32 0.0078125, %v2389_v43  ;;  %v2226_v60 = vmul.f32 %v4065_v40, %v4065_v40  ;;  %v2424_v56 = vmul.f32 %v4098_v55, %v4098_v55 }
 0x734   :  { %v4073_v48 = vsub.f32 %v4011_v46, %v2403_v51  ;;  %2238 = vadd.xlane.f32.xlu0 %v2226_v60 }
 0x735   :  { %v2196_v13 = vpop.xlane.xlu1 %2195 }
 0x736   :  { %v2209_v9 = vmul.f32 0.0078125, %v2196_v13  ;;  %v2419_v32 = vmul.f32 %v4073_v48, %v4073_v48 }
 0x738   :  { %v4083_v47 = vsub.f32 %v4016_v63, %v2209_v9  ;;  %2430 = vadd.xlane.f32.xlu0 %v2420_v15  ;;  %2428 = vadd.xlane.f32.xlu1 %v2419_v32 }
 0x739   :  { %v2200_v42 = vpop.xlane.xlu1 %2199 }
 0x73a   :  { %v2211_v46 = vmul.f32 0.0078125, %v2200_v42  ;;  %v2225_v10 = vmul.f32 %v4083_v47, %v4083_v47 }
 0x73c   :  { %v4090_v11 = vsub.f32 %v4020_v23, %v2211_v46  ;;  %2434 = vadd.xlane.f32.xlu0 %v2422_v27  ;;  %2236 = vadd.xlane.f32.xlu1 %v2225_v10 }
 0x73d   :  { %v2202_v52 = vpop.xlane.xlu1 %2201 }
 0x73e   :  { %v2212_v63 = vmul.f32 0.0078125, %v2202_v52  ;;  %v2227_v45 = vmul.f32 %v4090_v11, %v4090_v11 }
 0x740   :  { %v4095_v38 = vsub.f32 %v4024_v4, %v2212_v63  ;;  %2240 = vadd.xlane.f32.xlu1 %v2227_v45 }
 0x741   :  { %v2393_v5 = vpop.xlane.xlu1 %2392 }
 0x742   :  { %v2405_v36 = vmul.f32 0.0078125, %v2393_v5  ;;  %v2228_v23 = vmul.f32 %v4095_v38, %v4095_v38 }
 0x744   :  { %v4103_v21 = vsub.f32 %v4029_v34, %v2405_v36  ;;  %2242 = vadd.xlane.f32.xlu0 %v2228_v23 }
 0x745   :  { %v2397_v19 = vpop.xlane.xlu1 %2396 }
 0x746   :  { %v2407_v29 = vmul.f32 0.0078125, %v2397_v19  ;;  %v2421_v4 = vmul.f32 %v4103_v21, %v4103_v21 }
 0x748   :  { %v4110_v30 = vsub.f32 %v4034_v58, %v2407_v29  ;;  %2438 = vadd.xlane.f32.xlu0 %v2424_v56  ;;  %2432 = vadd.xlane.f32.xlu1 %v2421_v4 }
 0x749   :  { %v2204_v53 = vpop.xlane.xlu1 %2203 }
 0x74a   :  { %v2213_v1 = vmul.f32 0.0078125, %v2204_v53  ;;  %v2423_v34 = vmul.f32 %v4110_v30, %v4110_v30 }
 0x74c   :  { %v4115_v37 = vsub.f32 %v4038_v50, %v2213_v1  ;;  %2436 = vadd.xlane.f32.xlu1 %v2423_v34 }
 0x74d   :  { %v2401_v22 = vpop.xlane.xlu1 %2400 }
 0x74e   :  { %v2409_v3 = vmul.f32 0.0078125, %v2401_v22  ;;  %v2229_v61 = vmul.f32 %v4115_v37, %v4115_v37 }
 0x750   :  { %v4120_v39 = vsub.f32 %v4041_v20, %v2409_v3  ;;  %2244 = vadd.xlane.f32.xlu1 %v2229_v61 }
 0x752   :  { %v2425_v58 = vmul.f32 %v4120_v39, %v4120_v39 }
 0x754   :  { %2440 = vadd.xlane.f32.xlu1 %v2425_v58 }
 0x755   :  { %3237 = shalt.err (!%p3234_p12)
}
 0x756   :  { %s3238_s20 = scalar_lea.hbm %s4237_s11, 128 }
 0x757   :  { %p3239_p13 = scmp.ne.s32.totalorder %s4237_s11, %s3238_s20  ;;  %p3242_p0 = scmp.lt.u32.totalorder %s3238_s20, %s4237_s11 }
 0x759   :  { %p3244_p1 = pnand %p3242_p0, %p3239_p13 }
 0x75b   :  { %3247 = shalt.err (!%p3244_p1)
}
 0x75c   :  { %s3326_s27 = smov 1   ;;  %v4141_v28 = vld [vmem:[%s4236_s10 + $0x7] ss:$0 sm:$0xff]  ;;  %v4147_v13 = vld [vmem:[%s4236_s10 + $0x8] ss:$0 sm:$0xff]  ;;  %s3327_s10 = smov [#allocation17]  }
 0x75d   :  { %2509 = dma.vmem_to_hbm [thread:$0]  %s2504_s4, 128, %s4237_s11, [#allocation4], %s3314_s23, %s3314_s23, %s3326_s27  }
 0x75e   :  { %s2515_s29 = sshll.u32 %s3327_s10, 4  ;;  %s3328_s18 = smov [#allocation19]   ;;  %s2516_s29 = int_to_ptr.vmem [resolvable:$true] %s2515_s29 }
 0x75f   :  { %s2527_s19 = sshll.u32 %s3328_s18, 4  ;;  %s3248_s9 = scalar_lea.vmem %s2516_s29, 1024  ;;  %s2528_s19 = int_to_ptr.vmem [resolvable:$true] %s2527_s19 }
 0x760   :  { %p3249_p2 = scmp.ne.s32.totalorder %s2516_s29, %s3248_s9  ;;  %p3253_p3 = scmp.lt.s32.totalorder %s2516_s29, %s2516_s29 }
 0x761   :  { %p3254_p4 = scmp.lt.s32.totalorder %s3248_s9, %s3248_s9 }
 0x763   :  { %p3255_p5 = por %p3254_p4, %p3253_p3 }
 0x765   :  { %p3256_p6 = pnand %p3255_p5, %p3249_p2 }
 0x7b5   :  { %v2231_v50 = vpop.xlane.xlu0 %2230  ;;  %v2233_v20 = vpop.xlane.xlu1 %2232 }
 0x7b6   :  { %v2246_v24 = vmul.f32 0.0078125, %v2231_v50  ;;  %v2247_v59 = vmul.f32 0.0078125, %v2233_v20 }
 0x7b8   :  { %v2254_v7 = vadd.f32 1e-05, %v2246_v24  ;;  %v2255_v54 = vadd.f32 1e-05, %v2247_v59 }
 0x7b9   :  { %v2427_v57 = vpop.xlane.xlu0 %2426 }
 0x7ba   :  { %3010 = vrsqrt.f32 %v2254_v7  ;;  %v2442_v17 = vmul.f32 0.0078125, %v2427_v57 }
 0x7bb   :  { %3012 = vrsqrt.f32 %v2255_v54 }
 0x7bc   :  { %v2450_v49 = vadd.f32 1e-05, %v2442_v17 }
 0x7bd   :  { %v2235_v41 = vpop.xlane.xlu0 %2234 }
 0x7be   :  { %3014 = vrsqrt.f32 %v2450_v49  ;;  %v2248_v25 = vmul.f32 0.0078125, %v2235_v41 }
 0x7c0   :  { %v2256_v33 = vadd.f32 1e-05, %v2248_v25 }
 0x7c1   :  { %v2239_v0 = vpop.xlane.xlu0 %2238 }
 0x7c2   :  { %3016 = vrsqrt.f32 %v2256_v33  ;;  %v2250_v31 = vmul.f32 0.0078125, %v2239_v0 }
 0x7c4   :  { %v3011_v8 = vpop.eup %3010  ;;  %v2258_v44 = vadd.f32 1e-05, %v2250_v31 }
 0x7c5   :  { %v3013_v43 = vpop.eup %3012  ;;  %v2270_v16 = vmul.f32 %v3011_v8, %v4045_v18  ;;  %v2431_v51 = vpop.xlane.xlu0 %2430 }
 0x7c6   :  { %v2429_v60 = vpop.xlane.xlu1 %2428  ;;  %v2271_v9 = vmul.f32 %v3013_v43, %v4048_v35  ;;  %3018 = vrsqrt.f32 %v2258_v44  ;;  %v2444_v15 = vmul.f32 0.0078125, %v2431_v51 }
 0x7c7   :  { %v2443_v32 = vmul.f32 0.0078125, %v2429_v60  ;;  %v2282_v42 = vmul.f32 %v4141_v28, %v2270_v16 }
 0x7c8   :  { %v3015_v46 = vpop.eup %3014  ;;  %v2283_v27 = vmul.f32 %v4141_v28, %v2271_v9  ;;  %v2452_v10 = vadd.f32 1e-05, %v2444_v15 }
 0x7c9   :  { %v2451_v6 = vadd.f32 1e-05, %v2443_v32  ;;  %v2294_v18 = vadd.f32 %v4147_v13, %v2282_v42  ;;  %v2466_v52 = vmul.f32 %v3015_v46, %v4055_v62  ;;  %v2435_v2 = vpop.xlane.xlu0 %2434 }
 0x7ca   :  { %v2237_v63 = vpop.xlane.xlu1 %2236  ;;  %v2295_v45 = vadd.f32 %v4147_v13, %v2283_v27  ;;  %3020 = vrsqrt.f32 %v2452_v10  ;;  %v2446_v35 = vmul.f32 0.0078125, %v2435_v2 }
 0x7cb   :  { %v2249_v5 = vmul.f32 0.0078125, %v2237_v63  ;;  %2302 = vst [vmem:[#allocation17] sm:$0xff] %v2294_v18  ;;  %v2474_v36 = vmul.f32 %v4141_v28, %v2466_v52  ;;  %3022 = vrsqrt.f32 %v2451_v6 }
 0x7cc   :  { %v3017_v23 = vpop.eup %3016  ;;  %2303 = vst [vmem:[#allocation17 + $0x8] sm:$0xff] %v2295_v45  ;;  %v2454_v19 = vadd.f32 1e-05, %v2446_v35 }
 0x7cd   :  { %v2257_v29 = vadd.f32 1e-05, %v2249_v5  ;;  %v2482_v56 = vadd.f32 %v4147_v13, %v2474_v36  ;;  %v2272_v4 = vmul.f32 %v3017_v23, %v4060_v12 }
 0x7ce   :  { %v2241_v62 = vpop.xlane.xlu1 %2240  ;;  %3024 = vrsqrt.f32 %v2454_v19 }
 0x7cf   :  { %v2251_v53 = vmul.f32 0.0078125, %v2241_v62  ;;  %2490 = vst [vmem:[#allocation19] sm:$0xff] %v2482_v56  ;;  %v2284_v1 = vmul.f32 %v4141_v28, %v2272_v4  ;;  %3026 = vrsqrt.f32 %v2257_v29 }
 0x7d0   :  { %v3019_v34 = vpop.eup %3018 }
 0x7d1   :  { %v2259_v22 = vadd.f32 1e-05, %v2251_v53  ;;  %v2296_v3 = vadd.f32 %v4147_v13, %v2284_v1  ;;  %v2274_v61 = vmul.f32 %v3019_v34, %v4065_v40  ;;  %v2243_v58 = vpop.xlane.xlu0 %2242 }
 0x7d2   :  { %v2252_v50 = vmul.f32 0.0078125, %v2243_v58 }
 0x7d3   :  { %3028 = vrsqrt.f32 %v2259_v22  ;;  %2304 = vst [vmem:[#allocation17 + $0x10] sm:$0xff] %v2296_v3  ;;  %v2286_v20 = vmul.f32 %v4141_v28, %v2274_v61 }
 0x7d4   :  { %v3021_v12 = vpop.eup %3020  ;;  %v2260_v24 = vadd.f32 1e-05, %v2252_v50 }
 0x7d5   :  { %v3023_v59 = vpop.eup %3022  ;;  %v2298_v7 = vadd.f32 %v4147_v13, %v2286_v20  ;;  %v2468_v54 = vmul.f32 %v3021_v12, %v4068_v14  ;;  %v2439_v57 = vpop.xlane.xlu0 %2438 }
 0x7d6   :  { %v2433_v17 = vpop.xlane.xlu1 %2432  ;;  %v2467_v49 = vmul.f32 %v3023_v59, %v4073_v48  ;;  %3030 = vrsqrt.f32 %v2260_v24  ;;  %v2448_v41 = vmul.f32 0.0078125, %v2439_v57 }
 0x7d7   :  { %v2445_v40 = vmul.f32 0.0078125, %v2433_v17  ;;  %2306 = vst [vmem:[#allocation17 + $0x20] sm:$0xff] %v2298_v7  ;;  %v2476_v25 = vmul.f32 %v4141_v28, %v2468_v54 }
 0x7d8   :  { %v3025_v33 = vpop.eup %3024  ;;  %v2475_v0 = vmul.f32 %v4141_v28, %v2467_v49  ;;  %v2456_v31 = vadd.f32 1e-05, %v2448_v41 }
 0x7d9   :  { %v2453_v8 = vadd.f32 1e-05, %v2445_v40  ;;  %v3027_v44 = vpop.eup %3026  ;;  %v2484_v43 = vadd.f32 %v4147_v13, %v2476_v25  ;;  %v2470_v14 = vmul.f32 %v3025_v33, %v4076_v26 }
 0x7da   :  { %v2437_v16 = vpop.xlane.xlu1 %2436  ;;  %v2483_v51 = vadd.f32 %v4147_v13, %v2475_v0  ;;  %v2273_v48 = vmul.f32 %v3027_v44, %v4083_v47  ;;  %3032 = vrsqrt.f32 %v2456_v31 }
 0x7db   :  { %v2447_v60 = vmul.f32 0.0078125, %v2437_v16  ;;  %2492 = vst [vmem:[#allocation19 + $0x10] sm:$0xff] %v2484_v43  ;;  %v2478_v9 = vmul.f32 %v4141_v28, %v2470_v14  ;;  %3034 = vrsqrt.f32 %v2453_v8 }
 0x7dc   :  { %2491 = vst [vmem:[#allocation19 + $0x8] sm:$0xff] %v2483_v51  ;;  %v2285_v32 = vmul.f32 %v4141_v28, %v2273_v48 }
 0x7dd   :  { %v3029_v15 = vpop.eup %3028  ;;  %v2455_v42 = vadd.f32 1e-05, %v2447_v60  ;;  %v2486_v46 = vadd.f32 %v4147_v13, %v2478_v9 }
 0x7de   :  { %v2275_v26 = vmul.f32 %v3029_v15, %v4090_v11  ;;  %v2245_v27 = vpop.xlane.xlu1 %2244  ;;  %v2297_v10 = vadd.f32 %v4147_v13, %v2285_v32 }
 0x7df   :  { %3036 = vrsqrt.f32 %v2455_v42  ;;  %v2253_v47 = vmul.f32 0.0078125, %v2245_v27  ;;  %2494 = vst [vmem:[#allocation19 + $0x20] sm:$0xff] %v2486_v46 }
 0x7e0   :  { %v2287_v6 = vmul.f32 %v4141_v28, %v2275_v26  ;;  %v3031_v18 = vpop.eup %3030  ;;  %2305 = vst [vmem:[#allocation17 + $0x18] sm:$0xff] %v2297_v10 }
 0x7e1   :  { %v2261_v52 = vadd.f32 1e-05, %v2253_v47  ;;  %v2276_v63 = vmul.f32 %v3031_v18, %v4095_v38 }
 0x7e2   :  { %v2299_v2 = vadd.f32 %v4147_v13, %v2287_v6  ;;  %v2441_v45 = vpop.xlane.xlu1 %2440 }
 0x7e3   :  { %3038 = vrsqrt.f32 %v2261_v52  ;;  %v2449_v35 = vmul.f32 0.0078125, %v2441_v45  ;;  %v2288_v11 = vmul.f32 %v4141_v28, %v2276_v63 }
 0x7e4   :  { %2307 = vst [vmem:[#allocation17 + $0x28] sm:$0xff] %v2299_v2  ;;  %v3033_v5 = vpop.eup %3032 }
 0x7e5   :  { %v2457_v36 = vadd.f32 1e-05, %v2449_v35  ;;  %v3035_v23 = vpop.eup %3034  ;;  %v2300_v19 = vadd.f32 %v4147_v13, %v2288_v11  ;;  %v2472_v29 = vmul.f32 %v3033_v5, %v4098_v55 }
 0x7e6   :  { %v2469_v56 = vmul.f32 %v3035_v23, %v4103_v21 }
 0x7e7   :  { %3040 = vrsqrt.f32 %v2457_v36  ;;  %2308 = vst [vmem:[#allocation17 + $0x30] sm:$0xff] %v2300_v19  ;;  %v2480_v4 = vmul.f32 %v4141_v28, %v2472_v29 }
 0x7e8   :  { %v2477_v62 = vmul.f32 %v4141_v28, %v2469_v56 }
 0x7e9   :  { %v3037_v38 = vpop.eup %3036  ;;  %v2488_v53 = vadd.f32 %v4147_v13, %v2480_v4 }
 0x7ea   :  { %v2471_v1 = vmul.f32 %v3037_v38, %v4110_v30  ;;  %v2485_v34 = vadd.f32 %v4147_v13, %v2477_v62 }
 0x7eb   :  { %2496 = vst [vmem:[#allocation19 + $0x30] sm:$0xff] %v2488_v53 }
 0x7ec   :  { %v2479_v22 = vmul.f32 %v4141_v28, %v2471_v1  ;;  %2493 = vst [vmem:[#allocation19 + $0x18] sm:$0xff] %v2485_v34 }
 0x7ed   :  { %v3039_v3 = vpop.eup %3038 }
 0x7ee   :  { %v2487_v55 = vadd.f32 %v4147_v13, %v2479_v22  ;;  %v2277_v21 = vmul.f32 %v3039_v3, %v4115_v37 }
 0x7f0   :  { %2495 = vst [vmem:[#allocation19 + $0x28] sm:$0xff] %v2487_v55  ;;  %v2289_v61 = vmul.f32 %v4141_v28, %v2277_v21 }
 0x7f1   :  { %v3041_v58 = vpop.eup %3040 }
 0x7f2   :  { %v2301_v50 = vadd.f32 %v4147_v13, %v2289_v61  ;;  %v2473_v30 = vmul.f32 %v3041_v58, %v4120_v39 }
 0x7f4   :  { %2309 = vst [vmem:[#allocation17 + $0x38] sm:$0xff] %v2301_v50  ;;  %v2481_v20 = vmul.f32 %v4141_v28, %v2473_v30 }
 0x7f5   :  { %3259 = shalt.err (!%p3256_p6)
}
 0x7f6   :  { %s3260_s6 = scalar_lea.hbm %s4238_s12, 1024 }
 0x7f7   :  { %p3261_p7 = scmp.ne.s32.totalorder %s4238_s12, %s3260_s6  ;;  %p3264_p8 = scmp.lt.u32.totalorder %s3260_s6, %s4238_s12 }
 0x7f9   :  { %p3266_p9 = pnand %p3264_p8, %p3261_p7 }
 0x7fb   :  { %3269 = shalt.err (!%p3266_p9)
}
 0x7fc   :  { %2521 = dma.vmem_to_hbm [thread:$0]  %s2516_s29, 1024, %s4238_s12, [#allocation18], %s4242_s1, %s4242_s1, %s3312_s17   ;;  %v2489_v37 = vadd.f32 %v4147_v13, %v2481_v20 }
 0x7fd   :  { %s3270_s2 = scalar_lea.vmem %s2528_s19, 1024  ;;  %p3275_p11 = scmp.lt.s32.totalorder %s2528_s19, %s2528_s19 }
 0x7fe   :  { %2497 = vst [vmem:[#allocation19 + $0x38] sm:$0xff] %v2489_v37  ;;  %p3271_p10 = scmp.ne.s32.totalorder %s2528_s19, %s3270_s2  ;;  %p3276_p12 = scmp.lt.s32.totalorder %s3270_s2, %s3270_s2 }
 0x800   :  { %p3277_p13 = por %p3276_p12, %p3275_p11 }
 0x802   :  { %p3278_p0 = pnand %p3277_p13, %p3271_p10 }
 0x804   :  { %3281 = shalt.err (!%p3278_p0)
}
 0x805   :  { %s3282_s3 = scalar_lea.hbm %s4239_s13, 1024 }
 0x806   :  { %p3283_p1 = scmp.ne.s32.totalorder %s4239_s13, %s3282_s3  ;;  %p3286_p2 = scmp.lt.u32.totalorder %s3282_s3, %s4239_s13 }
 0x808   :  { %p3288_p3 = pnand %p3286_p2, %p3283_p1 }
 0x80a   :  { %3291 = shalt.err (!%p3288_p3)
}
 0x80b   :  { %2533 = dma.vmem_to_hbm [thread:$0]  %s2528_s19, 1024, %s4239_s13, [#allocation18], %s4242_s1, %s4242_s1, %s3312_s17  }
 0x80c   :  { %3302 = dma.done.wait [#allocation4], 128  }
 0x80d   :  { %3303 = vsyncadd [#allocation4], 4294967168 }
 0x80e   :  { %3304 = dma.done.wait [#allocation18], 2048  }
 0x80f   :  { %3305 = vsyncadd [#allocation18], 4294965248 }
 0x810   :  { %2543 = vsyncpa [#allocation3], 1 }
 0x811   :  { %2544 = vsyncpa [#allocation6], 1 }
 0x812   :  { %2545 = vsyncpa [#allocation9], 1 }
 0x813   :  { %2546 = vsyncpa [#allocation12], 1 }
 0x814   :  { %2547 = vsyncpa [#allocation15], 1 }
 0x815   :  { %2548 = vsyncpa [#allocation4], 1 }
 0x816   :  { %2549 = vsyncpa [#allocation18], 1 }

</bundles_post_ra>
